<compile_context>
chip_gen: v6e
topology: v6e:2x2x1
jax: 0.10.0
libtpu: 0.0.40
codegen_flags: <defaults>
</compile_context>

<pallas_src>
import jax
import jax.numpy as jnp
import numpy as np
from jax.experimental import pallas as pl
from jax.experimental.pallas import tpu as pltpu

# ----------------------------- model dims (small) -----------------------------
C_IN = 3                      # RGB input, as EfficientNet expects
C_STEM = 16                   # stem output channels (B5 uses 48)
EXPAND = 4                    # MBConv expansion ratio
C_MID = C_STEM * EXPAND       # 64
C_SE = 4                      # squeeze-excite reduced channels (0.25 * C_STEM)
C_HEAD = 32                   # "num_features" fed to the regression head (B5: 2048)
BN_EPS = 1e-3

H_IN = W_IN = 16
H_OUT = W_OUT = 8             # stem is stride 2, SAME
M_SP = H_OUT * W_OUT          # 64 output pixels (batch 1, implied by .item())
K_STEM = 9 * C_IN             # 27 stem im2col columns

# depthwise scratch: 16 zero rows above/below the 64 activation rows
PAD_OFF = 16
PAD_ROWS = PAD_OFF + M_SP + PAD_OFF   # 96

# packed per-channel-vector slab (lane-dense: 128 lanes, f32)
VEC_LANES = 128
(ROW_STEM_B, ROW_EXP_B, ROW_DW_SCALE, ROW_DW_SHIFT,
 ROW_SE_B1, ROW_SE_B2, ROW_PROJ_B, ROW_HEAD_B,
 ROW_FC_W, ROW_FC_B, ROW_DW_W0) = range(11)
VEC_ROWS = 24                 # 10 named rows + 9 depthwise taps = 19, padded to 24


# ----------------------------- fused Pallas kernel -----------------------------
def _fused_forward_kernel(cols_ref, stem_w_ref, exp_w_ref, se_w1_ref, se_w2_ref,
                          proj_w_ref, head_w_ref, vec_ref, o_ref, epad_ref):
    f32, bf16 = jnp.float32, jnp.bfloat16

    def vrow(row, width):                      # (1, width) f32 view of the slab
        return vec_ref[row:row + 1, 0:width]

    def swish(z):
        return z * jax.nn.sigmoid(z)

    # ---- stem: 3x3 s2 SAME conv (pre-gathered taps) + folded BN + swish ----
    h = jnp.dot(cols_ref[...], stem_w_ref[...], preferred_element_type=f32)
    h = swish(h + vrow(ROW_STEM_B, C_STEM))                      # (64, 16) f32

    # ---- MBConv expand 1x1 + folded BN + swish ----
    e = jnp.dot(h.astype(bf16), exp_w_ref[...], preferred_element_type=f32)
    e = swish(e + vrow(ROW_EXP_B, C_MID))                        # (64, 64) f32

    # ---- depthwise 3x3 s1 SAME, taps gathered in-kernel on VMEM scratch ----
    # rows of e/epad are flat spatial index r = 8*oh + ow; channels on lanes.
    zpad = jnp.zeros((PAD_OFF, C_MID), f32)
    epad_ref[0:PAD_OFF, :] = zpad
    epad_ref[PAD_OFF + M_SP:PAD_ROWS, :] = zpad
    epad_ref[PAD_OFF:PAD_OFF + M_SP, :] = e

    ow = jax.lax.broadcasted_iota(jnp.int32, (M_SP, C_MID), 0) % W_OUT
    left_ok = ow >= 1                  # tap column dw=0 invalid at ow == 0
    right_ok = ow <= W_OUT - 2         # tap column dw=2 invalid at ow == W-1

    acc = jnp.zeros((M_SP, C_MID), f32)
    for dh in range(3):                # static 9-tap unroll (tiny VPU work)
        for dw in range(3):
            off = W_OUT * (dh - 1) + (dw - 1)        # flat row offset of the tap
            start = PAD_OFF + off                    # in [7, 25]
            tap = epad_ref[start:start + M_SP, :]    # h-padding rows read as 0
            if dw == 0:
                tap = jnp.where(left_ok, tap, 0.0)
            elif dw == 2:
                tap = jnp.where(right_ok, tap, 0.0)
            acc = acc + tap * vrow(ROW_DW_W0 + dh * 3 + dw, C_MID)
    d = swish(acc * vrow(ROW_DW_SCALE, C_MID) + vrow(ROW_DW_SHIFT, C_MID))

    # ---- squeeze-excite: global pool -> FC+swish -> FC+sigmoid -> scale ----
    pooled = jnp.mean(d, axis=0, keepdims=True)                  # (1, 64)
    s1 = jnp.dot(pooled.astype(bf16), se_w1_ref[...], preferred_element_type=f32)
    s1 = swish(s1 + vrow(ROW_SE_B1, C_SE))                       # (1, 4)
    s2 = jnp.dot(s1.astype(bf16), se_w2_ref[...], preferred_element_type=f32)
    s2 = jax.nn.sigmoid(s2 + vrow(ROW_SE_B2, C_MID))             # (1, 64)
    se = d * s2

    # ---- project 1x1 + folded BN (linear) + fused residual skip ----
    pj = jnp.dot(se.astype(bf16), proj_w_ref[...], preferred_element_type=f32)
    blk = pj + vrow(ROW_PROJ_B, C_STEM) + h                      # (64, 16)

    # ---- head 1x1 + folded BN + swish ----
    feat = jnp.dot(blk.astype(bf16), head_w_ref[...], preferred_element_type=f32)
    feat = swish(feat + vrow(ROW_HEAD_B, C_HEAD))                # (64, 32)

    # ---- global average pool + (dropout: eval identity) + Linear(C_HEAD, 1)
    # N=1 FC done as VPU multiply + lane reduce (no MXU pass for 32 MACs).
    gpool = jnp.mean(feat, axis=0, keepdims=True)                # (1, 32)
    y = jnp.sum(gpool * vrow(ROW_FC_W, C_HEAD), axis=-1, keepdims=True)
    y = y + vrow(ROW_FC_B, 1)                                    # (1, 1)

    # lane-dense output slab; wrapper reads column 0
    o_ref[...] = jnp.broadcast_to(y, o_ref.shape).astype(o_ref.dtype)


# ----------------------------- JAX glue (layout / im2col / params) ------------
def _same_out_pad(size, stride, k):
    out = -(-size // stride)
    pad = max((out - 1) * stride + k - size, 0)
    return out, pad // 2, pad - pad // 2


def im2col(x_nhwc, k, stride):
    """TF/EfficientNet 'static same' padding im2col. Returns (B,Ho,Wo,k*k,C)."""
    B, H, W, C = x_nhwc.shape
    Ho, ph0, ph1 = _same_out_pad(H, stride, k)
    Wo, pw0, pw1 = _same_out_pad(W, stride, k)
    xp = jnp.pad(x_nhwc, ((0, 0), (ph0, ph1), (pw0, pw1), (0, 0)))
    taps = []
    for dh in range(k):
        for dw in range(k):
            taps.append(xp[:, dh:dh + Ho * stride:stride, dw:dw + Wo * stride:stride, :])
    cols = jnp.stack(taps, axis=-2)  # (B, Ho, Wo, k*k, C)
    return cols, Ho, Wo


def _fold_bn(gamma, beta, mean, var, eps=BN_EPS):
    scale = gamma / jnp.sqrt(var + eps)
    shift = beta - mean * scale
    return scale, shift


def init_params(key):
    ks = jax.random.split(key, 16)

    def nrm(k, shape, s=0.1):
        return s * jax.random.normal(k, shape, dtype=jnp.float32)

    def bn(k, c):
        k1, k2, k3, k4 = jax.random.split(k, 4)
        gamma = 1.0 + 0.1 * jax.random.normal(k1, (c,), jnp.float32)
        beta = 0.1 * jax.random.normal(k2, (c,), jnp.float32)
        mean = 0.1 * jax.random.normal(k3, (c,), jnp.float32)
        var = jax.random.uniform(k4, (c,), jnp.float32, 0.5, 1.5)
        return _fold_bn(gamma, beta, mean, var)

    p = {}
    # stem conv 3x3 s2 (no bias) + BN folded into the weights
    w = nrm(ks[0], (3, 3, C_IN, C_STEM)).reshape(K_STEM, C_STEM)
    sc, sh = bn(ks[1], C_STEM)
    p["stem_w"], p["stem_b"] = w * sc[None, :], sh
    # MBConv expand 1x1 + BN
    w = nrm(ks[2], (C_STEM, C_MID)); sc, sh = bn(ks[3], C_MID)
    p["exp_w"], p["exp_b"] = w * sc[None, :], sh
    # depthwise 3x3 + BN (scale/shift applied inside the kernel)
    p["dw_w"] = nrm(ks[4], (9, C_MID))
    p["dw_scale"], p["dw_shift"] = bn(ks[5], C_MID)
    # squeeze-excite (1x1 convs with bias == FCs)
    p["se_w1"], p["se_b1"] = nrm(ks[6], (C_MID, C_SE)), nrm(ks[7], (C_SE,))
    p["se_w2"], p["se_b2"] = nrm(ks[8], (C_SE, C_MID)), nrm(ks[9], (C_MID,))
    # project 1x1 + BN, no activation
    w = nrm(ks[10], (C_MID, C_STEM)); sc, sh = bn(ks[11], C_STEM)
    p["proj_w"], p["proj_b"] = w * sc[None, :], sh
    # head 1x1 + BN + swish
    w = nrm(ks[12], (C_STEM, C_HEAD)); sc, sh = bn(ks[13], C_HEAD)
    p["head_w"], p["head_b"] = w * sc[None, :], sh
    # custom regression head: Linear(num_features, 1)
    p["fc_w"], p["fc_b"] = nrm(ks[14], (C_HEAD, 1)), nrm(ks[15], (1,))

    # --- pack for the fused kernel ---------------------------------------
    kern = {}
    # MXU operands go in as bf16 (halves HBM/VMEM bytes; f32 accumulation in-kernel)
    for name in ("stem_w", "exp_w", "se_w1", "se_w2", "proj_w", "head_w"):
        kern[name] = p[name].astype(jnp.bfloat16)

    def row(v):
        v = jnp.asarray(v, jnp.float32).reshape(-1)
        return jnp.pad(v, (0, VEC_LANES - v.shape[0]))

    rows = [row(p["stem_b"]), row(p["exp_b"]), row(p["dw_scale"]), row(p["dw_shift"]),
            row(p["se_b1"]), row(p["se_b2"]), row(p["proj_b"]), row(p["head_b"]),
            row(p["fc_w"].reshape(-1)), row(p["fc_b"])]
    rows += [row(p["dw_w"][k]) for k in range(9)]
    vec = jnp.stack(rows, axis=0)
    kern["vec"] = jnp.pad(vec, ((0, VEC_ROWS - vec.shape[0]), (0, 0)))   # (24, 128) f32
    p["kernel"] = kern
    return p


@jax.jit
def efficientnet_regressor_forward(x_nchw, params):
    """Returns (1, 1) float32 regression output (batch 1, as forward()'s .item() implies)."""
    B, _, H, W = x_nchw.shape
    assert B == 1 and H == H_IN and W == W_IN
    x = jnp.transpose(x_nchw, (0, 2, 3, 1)).astype(jnp.float32)  # NCHW -> NHWC

    # Stem im2col stays wrapper-side: the raw input has only C_IN=3 channels, so its
    # taps cannot map onto the 128-lane axis; it is tiny (64x27). The hot, blown-up
    # C_MID=64 depthwise gather is done in-kernel on VMEM instead.
    cols, Ho, Wo = im2col(x, 3, 2)
    cols = cols.reshape(B * Ho * Wo, K_STEM).astype(jnp.bfloat16)

    k = params["kernel"]
    out = pl.pallas_call(
        _fused_forward_kernel,
        out_shape=jax.ShapeDtypeStruct((1, VEC_LANES), jnp.float32),
        grid=(1,),
        in_specs=[
            pl.BlockSpec((M_SP, K_STEM), lambda i: (0, 0)),
            pl.BlockSpec((K_STEM, C_STEM), lambda i: (0, 0)),
            pl.BlockSpec((C_STEM, C_MID), lambda i: (0, 0)),
            pl.BlockSpec((C_MID, C_SE), lambda i: (0, 0)),
            pl.BlockSpec((C_SE, C_MID), lambda i: (0, 0)),
            pl.BlockSpec((C_MID, C_STEM), lambda i: (0, 0)),
            pl.BlockSpec((C_STEM, C_HEAD), lambda i: (0, 0)),
            pl.BlockSpec((VEC_ROWS, VEC_LANES), lambda i: (0, 0)),
        ],
        out_specs=pl.BlockSpec((1, VEC_LANES), lambda i: (0, 0)),
        scratch_shapes=[pltpu.VMEM((PAD_ROWS, C_MID), jnp.float32)],
        compiler_params=pltpu.CompilerParams(
            dimension_semantics=("arbitrary",),
            vmem_limit_bytes=16 * 1024 * 1024,
        ),
    )(cols, k["stem_w"], k["exp_w"], k["se_w1"], k["se_w2"],
      k["proj_w"], k["head_w"], k["vec"])
    return out[:, :1]                                            # (1, 1)


def reference_forward(x_nchw, p):
    """Pure-JAX reference (same bf16-input / f32-accumulate matmul convention)."""
    f32, bf16 = jnp.float32, jnp.bfloat16

    def mm(a, w):
        return jnp.dot(a.astype(bf16), w.astype(bf16), preferred_element_type=f32)

    x = jnp.transpose(x_nchw, (0, 2, 3, 1)).astype(f32)
    cols, Ho, Wo = im2col(x, 3, 2)
    M = x.shape[0] * Ho * Wo
    h = mm(cols.reshape(M, K_STEM), p["stem_w"]) + p["stem_b"]
    h = h * jax.nn.sigmoid(h)
    e = mm(h, p["exp_w"]) + p["exp_b"]
    e = e * jax.nn.sigmoid(e)
    ep = jnp.pad(e.reshape(Ho, Wo, C_MID), ((1, 1), (1, 1), (0, 0)))
    acc = jnp.zeros((Ho, Wo, C_MID), f32)
    for dh in range(3):
        for dw in range(3):
            acc = acc + ep[dh:dh + Ho, dw:dw + Wo, :] * p["dw_w"][dh * 3 + dw]
    d = acc * p["dw_scale"] + p["dw_shift"]
    d = (d * jax.nn.sigmoid(d)).reshape(M, C_MID)
    pooled = jnp.mean(d, axis=0, keepdims=True)
    s1 = mm(pooled, p["se_w1"]) + p["se_b1"]
    s1 = s1 * jax.nn.sigmoid(s1)
    s2 = jax.nn.sigmoid(mm(s1, p["se_w2"]) + p["se_b2"])
    se = d * s2
    blk = mm(se, p["proj_w"]) + p["proj_b"] + h
    feat = mm(blk, p["head_w"]) + p["head_b"]
    feat = feat * jax.nn.sigmoid(feat)
    g = jnp.mean(feat, axis=0, keepdims=True)
    return jnp.sum(g * p["fc_w"].reshape(1, C_HEAD), axis=-1, keepdims=True) + p["fc_b"]


def predict_age(x_nchw, params):
    """Mirrors forward(): int(model(x).item())."""
    out = jax.block_until_ready(efficientnet_regressor_forward(x_nchw, params))
    return int(float(out[0, 0]))  # Python int() truncates toward zero, like torch


# ----------------------------------- main --------------------------------------
if __name__ == "__main__":
    key = jax.random.PRNGKey(0)
    k_params, k_x = jax.random.split(key)
    params = init_params(k_params)

    # .item() in the original forward implies batch size 1 (transform's unsqueeze(0)).
    x = jax.random.normal(k_x, (1, C_IN, H_IN, W_IN), dtype=jnp.float32)  # NCHW

    out = jax.block_until_ready(efficientnet_regressor_forward(x, params))
    ref = jax.block_until_ready(reference_forward(x, params))
    np.testing.assert_allclose(np.asarray(out), np.asarray(ref), rtol=1e-2, atol=5e-3)

    age = predict_age(x, params)
    assert isinstance(age, int)
    print("KERNEL_OK")
</pallas_src>

<mosaic_0001>
module attributes {stable_mosaic.version = 11 : i64} {
  func.func @_fused_forward_kernel(%arg0: i32, %arg1: memref<64x27xbf16, #tpu.memory_space<vmem>>, %arg2: memref<27x16xbf16, #tpu.memory_space<vmem>>, %arg3: memref<16x64xbf16, #tpu.memory_space<vmem>>, %arg4: memref<64x4xbf16, #tpu.memory_space<vmem>>, %arg5: memref<4x64xbf16, #tpu.memory_space<vmem>>, %arg6: memref<64x16xbf16, #tpu.memory_space<vmem>>, %arg7: memref<16x32xbf16, #tpu.memory_space<vmem>>, %arg8: memref<24x128xf32, #tpu.memory_space<vmem>>, %arg9: memref<1x128xf32, #tpu.memory_space<vmem>>, %arg10: memref<96x64xf32, #tpu.memory_space<vmem>>) attributes {dimension_semantics = [#tpu.dimension_semantics<arbitrary>], iteration_bounds = array<i64: 1>, scalar_prefetch = 0 : i64, scratch_operands = 1 : i64, tpu.core_type = #tpu.core_type<tc>, window_params = [{pipeline_mode = #tpu.pipeline_mode<synchronous>, transform_indices = @transform_0, window_bounds = array<i64: 64, 27>}, {pipeline_mode = #tpu.pipeline_mode<synchronous>, transform_indices = @transform_1, window_bounds = array<i64: 27, 16>}, {pipeline_mode = #tpu.pipeline_mode<synchronous>, transform_indices = @transform_2, window_bounds = array<i64: 16, 64>}, {pipeline_mode = #tpu.pipeline_mode<synchronous>, transform_indices = @transform_3, window_bounds = array<i64: 64, 4>}, {pipeline_mode = #tpu.pipeline_mode<synchronous>, transform_indices = @transform_4, window_bounds = array<i64: 4, 64>}, {pipeline_mode = #tpu.pipeline_mode<synchronous>, transform_indices = @transform_5, window_bounds = array<i64: 64, 16>}, {pipeline_mode = #tpu.pipeline_mode<synchronous>, transform_indices = @transform_6, window_bounds = array<i64: 16, 32>}, {pipeline_mode = #tpu.pipeline_mode<synchronous>, transform_indices = @transform_7, window_bounds = array<i64: 24, 128>}, {pipeline_mode = #tpu.pipeline_mode<synchronous>, transform_indices = @transform_8, window_bounds = array<i64: 1, 128>}]} {
    %c0 = arith.constant 0 : index
    %c0_0 = arith.constant 0 : index
    %0 = vector.load %arg1[%c0, %c0_0] : memref<64x27xbf16, #tpu.memory_space<vmem>>, vector<64x27xbf16>
    %c0_1 = arith.constant 0 : index
    %c0_2 = arith.constant 0 : index
    %1 = vector.load %arg2[%c0_1, %c0_2] : memref<27x16xbf16, #tpu.memory_space<vmem>>, vector<27x16xbf16>
    %cst = arith.constant dense<0.000000e+00> : vector<64x16xf32>
    %2 = tpu.matmul %0, %1, %cst {dimension_numbers = #tpu.dot_dimension_numbers<[1], [0], [0], [1], [0, 0, 1, 1], [], []>} : vector<64x27xbf16>, vector<27x16xbf16>, vector<64x16xf32> -> vector<64x16xf32>
    %c0_3 = arith.constant 0 : index
    %c0_4 = arith.constant 0 : index
    %3 = vector.load %arg8[%c0_3, %c0_4] : memref<24x128xf32, #tpu.memory_space<vmem>>, vector<1x16xf32>
    %4 = vector.broadcast %3 : vector<1x16xf32> to vector<64x16xf32>
    %5 = arith.addf %2, %4 : vector<64x16xf32>
    %6 = arith.negf %5 : vector<64x16xf32>
    %7 = math.exp %6 : vector<64x16xf32>
    %cst_5 = arith.constant 1.000000e+00 : f32
    %8 = vector.broadcast %cst_5 : f32 to vector<64x16xf32>
    %9 = arith.addf %8, %7 : vector<64x16xf32>
    %10 = arith.divf %8, %9 : vector<64x16xf32>
    %11 = arith.mulf %5, %10 : vector<64x16xf32>
    %12 = arith.truncf %11 : vector<64x16xf32> to vector<64x16xbf16>
    %c0_6 = arith.constant 0 : index
    %c0_7 = arith.constant 0 : index
    %13 = vector.load %arg3[%c0_6, %c0_7] : memref<16x64xbf16, #tpu.memory_space<vmem>>, vector<16x64xbf16>
    %cst_8 = arith.constant dense<0.000000e+00> : vector<64x64xf32>
    %14 = tpu.matmul %12, %13, %cst_8 {dimension_numbers = #tpu.dot_dimension_numbers<[1], [0], [0], [1], [0, 0, 1, 1], [], []>} : vector<64x16xbf16>, vector<16x64xbf16>, vector<64x64xf32> -> vector<64x64xf32>
    %c1 = arith.constant 1 : index
    %c0_9 = arith.constant 0 : index
    %15 = vector.load %arg8[%c1, %c0_9] : memref<24x128xf32, #tpu.memory_space<vmem>>, vector<1x64xf32>
    %16 = vector.broadcast %15 : vector<1x64xf32> to vector<64x64xf32>
    %17 = arith.addf %14, %16 : vector<64x64xf32>
    %18 = arith.negf %17 : vector<64x64xf32>
    %19 = math.exp %18 : vector<64x64xf32>
    %cst_10 = arith.constant 1.000000e+00 : f32
    %20 = vector.broadcast %cst_10 : f32 to vector<64x64xf32>
    %21 = arith.addf %20, %19 : vector<64x64xf32>
    %22 = arith.divf %20, %21 : vector<64x64xf32>
    %23 = arith.mulf %17, %22 : vector<64x64xf32>
    %cst_11 = arith.constant 0.000000e+00 : f32
    %24 = vector.broadcast %cst_11 : f32 to vector<16x64xf32>
    %c0_12 = arith.constant 0 : index
    %c0_13 = arith.constant 0 : index
    %25 = vector.load %arg10[%c0_12, %c0_13] : memref<96x64xf32, #tpu.memory_space<vmem>>, vector<16x64xf32>
    tpu.vector_store %arg10[%c0_12, %c0_13], %24 {strides = array<i32>} : memref<96x64xf32, #tpu.memory_space<vmem>>, vector<16x64xf32>,
    %c80 = arith.constant 80 : index
    %c0_14 = arith.constant 0 : index
    %26 = vector.load %arg10[%c80, %c0_14] : memref<96x64xf32, #tpu.memory_space<vmem>>, vector<16x64xf32>
    tpu.vector_store %arg10[%c80, %c0_14], %24 {strides = array<i32>} : memref<96x64xf32, #tpu.memory_space<vmem>>, vector<16x64xf32>,
    %c16 = arith.constant 16 : index
    %c0_15 = arith.constant 0 : index
    %27 = vector.load %arg10[%c16, %c0_15] : memref<96x64xf32, #tpu.memory_space<vmem>>, vector<64x64xf32>
    tpu.vector_store %arg10[%c16, %c0_15], %23 {strides = array<i32>} : memref<96x64xf32, #tpu.memory_space<vmem>>, vector<64x64xf32>,
    %28 = tpu.iota {dimensions = array<i32: 0>} : vector<64x64xi32>
    %c8_i32 = arith.constant 8 : i32
    %c0_i32 = arith.constant 0 : i32
    %29 = arith.cmpi eq, %c8_i32, %c0_i32 : i32
    %c1_i32 = arith.constant 1 : i32
    %30 = arith.select %29, %c1_i32, %c8_i32 : i32
    %31 = vector.broadcast %30 : i32 to vector<64x64xi32>
    %32 = arith.remsi %28, %31 : vector<64x64xi32>
    %c0_i32_16 = arith.constant 0 : i32
    %33 = vector.broadcast %c0_i32_16 : i32 to vector<64x64xi32>
    %34 = arith.cmpi ne, %32, %33 : vector<64x64xi32>
    %c0_i32_17 = arith.constant 0 : i32
    %35 = vector.broadcast %c0_i32_17 : i32 to vector<64x64xi32>
    %36 = arith.cmpi slt, %32, %35 : vector<64x64xi32>
    %c0_i32_18 = arith.constant 0 : i32
    %37 = arith.cmpi slt, %30, %c0_i32_18 : i32
    %38 = vector.broadcast %37 : i1 to vector<64x64xi1>
    %39 = vector.broadcast %38 : vector<64x64xi1> to vector<64x64xi1>
    %40 = arith.xori %36, %39 : vector<64x64xi1>
    %41 = arith.andi %40, %34 : vector<64x64xi1>
    %42 = vector.broadcast %30 : i32 to vector<64x64xi32>
    %43 = arith.addi %32, %42 : vector<64x64xi32>
    %44 = arith.select %41, %43, %32 : vector<64x64xi1>, vector<64x64xi32>
    %c1_i32_19 = arith.constant 1 : i32
    %45 = vector.broadcast %c1_i32_19 : i32 to vector<64x64xi32>
    %46 = arith.cmpi sge, %44, %45 : vector<64x64xi32>
    %c6_i32 = arith.constant 6 : i32
    %47 = vector.broadcast %c6_i32 : i32 to vector<64x64xi32>
    %48 = arith.cmpi sle, %44, %47 : vector<64x64xi32>
    %cst_20 = arith.constant 0.000000e+00 : f32
    %49 = vector.broadcast %cst_20 : f32 to vector<64x64xf32>
    %c7 = arith.constant 7 : index
    %c0_21 = arith.constant 0 : index
    %50 = vector.load %arg10[%c7, %c0_21] : memref<96x64xf32, #tpu.memory_space<vmem>>, vector<64x64xf32>
    %cst_22 = arith.constant 0.000000e+00 : f32
    %51 = vector.broadcast %cst_22 : f32 to vector<64x64xf32>
    %52 = arith.select %46, %50, %51 : vector<64x64xi1>, vector<64x64xf32>
    %c10 = arith.constant 10 : index
    %c0_23 = arith.constant 0 : index
    %53 = vector.load %arg8[%c10, %c0_23] : memref<24x128xf32, #tpu.memory_space<vmem>>, vector<1x64xf32>
    %54 = vector.broadcast %53 : vector<1x64xf32> to vector<64x64xf32>
    %55 = arith.mulf %52, %54 : vector<64x64xf32>
    %56 = arith.addf %49, %55 : vector<64x64xf32>
    %c8 = arith.constant 8 : index
    %c0_24 = arith.constant 0 : index
    %57 = vector.load %arg10[%c8, %c0_24] : memref<96x64xf32, #tpu.memory_space<vmem>>, vector<64x64xf32>
    %c11 = arith.constant 11 : index
    %c0_25 = arith.constant 0 : index
    %58 = vector.load %arg8[%c11, %c0_25] : memref<24x128xf32, #tpu.memory_space<vmem>>, vector<1x64xf32>
    %59 = vector.broadcast %58 : vector<1x64xf32> to vector<64x64xf32>
    %60 = arith.mulf %57, %59 : vector<64x64xf32>
    %61 = arith.addf %56, %60 : vector<64x64xf32>
    %c9 = arith.constant 9 : index
    %c0_26 = arith.constant 0 : index
    %62 = vector.load %arg10[%c9, %c0_26] : memref<96x64xf32, #tpu.memory_space<vmem>>, vector<64x64xf32>
    %cst_27 = arith.constant 0.000000e+00 : f32
    %63 = vector.broadcast %cst_27 : f32 to vector<64x64xf32>
    %64 = arith.select %48, %62, %63 : vector<64x64xi1>, vector<64x64xf32>
    %c12 = arith.constant 12 : index
    %c0_28 = arith.constant 0 : index
    %65 = vector.load %arg8[%c12, %c0_28] : memref<24x128xf32, #tpu.memory_space<vmem>>, vector<1x64xf32>
    %66 = vector.broadcast %65 : vector<1x64xf32> to vector<64x64xf32>
    %67 = arith.mulf %64, %66 : vector<64x64xf32>
    %68 = arith.addf %61, %67 : vector<64x64xf32>
    %c15 = arith.constant 15 : index
    %c0_29 = arith.constant 0 : index
    %69 = vector.load %arg10[%c15, %c0_29] : memref<96x64xf32, #tpu.memory_space<vmem>>, vector<64x64xf32>
    %cst_30 = arith.constant 0.000000e+00 : f32
    %70 = vector.broadcast %cst_30 : f32 to vector<64x64xf32>
    %71 = arith.select %46, %69, %70 : vector<64x64xi1>, vector<64x64xf32>
    %c13 = arith.constant 13 : index
    %c0_31 = arith.constant 0 : index
    %72 = vector.load %arg8[%c13, %c0_31] : memref<24x128xf32, #tpu.memory_space<vmem>>, vector<1x64xf32>
    %73 = vector.broadcast %72 : vector<1x64xf32> to vector<64x64xf32>
    %74 = arith.mulf %71, %73 : vector<64x64xf32>
    %75 = arith.addf %68, %74 : vector<64x64xf32>
    %c16_32 = arith.constant 16 : index
    %c0_33 = arith.constant 0 : index
    %76 = vector.load %arg10[%c16_32, %c0_33] : memref<96x64xf32, #tpu.memory_space<vmem>>, vector<64x64xf32>
    %c14 = arith.constant 14 : index
    %c0_34 = arith.constant 0 : index
    %77 = vector.load %arg8[%c14, %c0_34] : memref<24x128xf32, #tpu.memory_space<vmem>>, vector<1x64xf32>
    %78 = vector.broadcast %77 : vector<1x64xf32> to vector<64x64xf32>
    %79 = arith.mulf %76, %78 : vector<64x64xf32>
    %80 = arith.addf %75, %79 : vector<64x64xf32>
    %c17 = arith.constant 17 : index
    %c0_35 = arith.constant 0 : index
    %81 = vector.load %arg10[%c17, %c0_35] : memref<96x64xf32, #tpu.memory_space<vmem>>, vector<64x64xf32>
    %cst_36 = arith.constant 0.000000e+00 : f32
    %82 = vector.broadcast %cst_36 : f32 to vector<64x64xf32>
    %83 = arith.select %48, %81, %82 : vector<64x64xi1>, vector<64x64xf32>
    %c15_37 = arith.constant 15 : index
    %c0_38 = arith.constant 0 : index
    %84 = vector.load %arg8[%c15_37, %c0_38] : memref<24x128xf32, #tpu.memory_space<vmem>>, vector<1x64xf32>
    %85 = vector.broadcast %84 : vector<1x64xf32> to vector<64x64xf32>
    %86 = arith.mulf %83, %85 : vector<64x64xf32>
    %87 = arith.addf %80, %86 : vector<64x64xf32>
    %c23 = arith.constant 23 : index
    %c0_39 = arith.constant 0 : index
    %88 = vector.load %arg10[%c23, %c0_39] : memref<96x64xf32, #tpu.memory_space<vmem>>, vector<64x64xf32>
    %cst_40 = arith.constant 0.000000e+00 : f32
    %89 = vector.broadcast %cst_40 : f32 to vector<64x64xf32>
    %90 = arith.select %46, %88, %89 : vector<64x64xi1>, vector<64x64xf32>
    %c16_41 = arith.constant 16 : index
    %c0_42 = arith.constant 0 : index
    %91 = vector.load %arg8[%c16_41, %c0_42] : memref<24x128xf32, #tpu.memory_space<vmem>>, vector<1x64xf32>
    %92 = vector.broadcast %91 : vector<1x64xf32> to vector<64x64xf32>
    %93 = arith.mulf %90, %92 : vector<64x64xf32>
    %94 = arith.addf %87, %93 : vector<64x64xf32>
    %c24 = arith.constant 24 : index
    %c0_43 = arith.constant 0 : index
    %95 = vector.load %arg10[%c24, %c0_43] : memref<96x64xf32, #tpu.memory_space<vmem>>, vector<64x64xf32>
    %c17_44 = arith.constant 17 : index
    %c0_45 = arith.constant 0 : index
    %96 = vector.load %arg8[%c17_44, %c0_45] : memref<24x128xf32, #tpu.memory_space<vmem>>, vector<1x64xf32>
    %97 = vector.broadcast %96 : vector<1x64xf32> to vector<64x64xf32>
    %98 = arith.mulf %95, %97 : vector<64x64xf32>
    %99 = arith.addf %94, %98 : vector<64x64xf32>
    %c25 = arith.constant 25 : index
    %c0_46 = arith.constant 0 : index
    %100 = vector.load %arg10[%c25, %c0_46] : memref<96x64xf32, #tpu.memory_space<vmem>>, vector<64x64xf32>
    %cst_47 = arith.constant 0.000000e+00 : f32
    %101 = vector.broadcast %cst_47 : f32 to vector<64x64xf32>
    %102 = arith.select %48, %100, %101 : vector<64x64xi1>, vector<64x64xf32>
    %c18 = arith.constant 18 : index
    %c0_48 = arith.constant 0 : index
    %103 = vector.load %arg8[%c18, %c0_48] : memref<24x128xf32, #tpu.memory_space<vmem>>, vector<1x64xf32>
    %104 = vector.broadcast %103 : vector<1x64xf32> to vector<64x64xf32>
    %105 = arith.mulf %102, %104 : vector<64x64xf32>
    %106 = arith.addf %99, %105 : vector<64x64xf32>
    %c2 = arith.constant 2 : index
    %c0_49 = arith.constant 0 : index
    %107 = vector.load %arg8[%c2, %c0_49] : memref<24x128xf32, #tpu.memory_space<vmem>>, vector<1x64xf32>
    %108 = vector.broadcast %107 : vector<1x64xf32> to vector<64x64xf32>
    %109 = arith.mulf %106, %108 : vector<64x64xf32>
    %c3 = arith.constant 3 : index
    %c0_50 = arith.constant 0 : index
    %110 = vector.load %arg8[%c3, %c0_50] : memref<24x128xf32, #tpu.memory_space<vmem>>, vector<1x64xf32>
    %111 = vector.broadcast %110 : vector<1x64xf32> to vector<64x64xf32>
    %112 = arith.addf %109, %111 : vector<64x64xf32>
    %113 = arith.negf %112 : vector<64x64xf32>
    %114 = math.exp %113 : vector<64x64xf32>
    %cst_51 = arith.constant 1.000000e+00 : f32
    %115 = vector.broadcast %cst_51 : f32 to vector<64x64xf32>
    %116 = arith.addf %115, %114 : vector<64x64xf32>
    %117 = arith.divf %115, %116 : vector<64x64xf32>
    %118 = arith.mulf %112, %117 : vector<64x64xf32>
    %cst_52 = arith.constant dense<0.000000e+00> : vector<64xf32>
    %119 = vector.multi_reduction <add>, %118, %cst_52 [0] : vector<64x64xf32> to vector<64xf32>
    %120 = vector.shape_cast %119 : vector<64xf32> to vector<1x64xf32>
    %cst_53 = arith.constant 6.400000e+01 : f32
    %121 = vector.broadcast %cst_53 : f32 to vector<1x64xf32>
    %122 = arith.divf %120, %121 : vector<1x64xf32>
    %123 = arith.truncf %122 : vector<1x64xf32> to vector<1x64xbf16>
    %c0_54 = arith.constant 0 : index
    %c0_55 = arith.constant 0 : index
    %124 = vector.load %arg4[%c0_54, %c0_55] : memref<64x4xbf16, #tpu.memory_space<vmem>>, vector<64x4xbf16>
    %cst_56 = arith.constant dense<0.000000e+00> : vector<1x4xf32>
    %125 = tpu.matmul %123, %124, %cst_56 {dimension_numbers = #tpu.dot_dimension_numbers<[1], [0], [0], [1], [0, 0, 1, 1], [], []>} : vector<1x64xbf16>, vector<64x4xbf16>, vector<1x4xf32> -> vector<1x4xf32>
    %c4 = arith.constant 4 : index
    %c0_57 = arith.constant 0 : index
    %126 = vector.load %arg8[%c4, %c0_57] : memref<24x128xf32, #tpu.memory_space<vmem>>, vector<1x4xf32>
    %127 = arith.addf %125, %126 : vector<1x4xf32>
    %128 = arith.negf %127 : vector<1x4xf32>
    %129 = math.exp %128 : vector<1x4xf32>
    %cst_58 = arith.constant 1.000000e+00 : f32
    %130 = vector.broadcast %cst_58 : f32 to vector<1x4xf32>
    %131 = arith.addf %130, %129 : vector<1x4xf32>
    %132 = arith.divf %130, %131 : vector<1x4xf32>
    %133 = arith.mulf %127, %132 : vector<1x4xf32>
    %134 = arith.truncf %133 : vector<1x4xf32> to vector<1x4xbf16>
    %c0_59 = arith.constant 0 : index
    %c0_60 = arith.constant 0 : index
    %135 = vector.load %arg5[%c0_59, %c0_60] : memref<4x64xbf16, #tpu.memory_space<vmem>>, vector<4x64xbf16>
    %cst_61 = arith.constant dense<0.000000e+00> : vector<1x64xf32>
    %136 = tpu.matmul %134, %135, %cst_61 {dimension_numbers = #tpu.dot_dimension_numbers<[1], [0], [0], [1], [0, 0, 1, 1], [], []>} : vector<1x4xbf16>, vector<4x64xbf16>, vector<1x64xf32> -> vector<1x64xf32>
    %c5 = arith.constant 5 : index
    %c0_62 = arith.constant 0 : index
    %137 = vector.load %arg8[%c5, %c0_62] : memref<24x128xf32, #tpu.memory_space<vmem>>, vector<1x64xf32>
    %138 = arith.addf %136, %137 : vector<1x64xf32>
    %139 = arith.negf %138 : vector<1x64xf32>
    %140 = math.exp %139 : vector<1x64xf32>
    %cst_63 = arith.constant 1.000000e+00 : f32
    %141 = vector.broadcast %cst_63 : f32 to vector<1x64xf32>
    %142 = arith.addf %141, %140 : vector<1x64xf32>
    %143 = arith.divf %141, %142 : vector<1x64xf32>
    %144 = vector.broadcast %143 : vector<1x64xf32> to vector<64x64xf32>
    %145 = arith.mulf %118, %144 : vector<64x64xf32>
    %146 = arith.truncf %145 : vector<64x64xf32> to vector<64x64xbf16>
    %c0_64 = arith.constant 0 : index
    %c0_65 = arith.constant 0 : index
    %147 = vector.load %arg6[%c0_64, %c0_65] : memref<64x16xbf16, #tpu.memory_space<vmem>>, vector<64x16xbf16>
    %cst_66 = arith.constant dense<0.000000e+00> : vector<64x16xf32>
    %148 = tpu.matmul %146, %147, %cst_66 {dimension_numbers = #tpu.dot_dimension_numbers<[1], [0], [0], [1], [0, 0, 1, 1], [], []>} : vector<64x64xbf16>, vector<64x16xbf16>, vector<64x16xf32> -> vector<64x16xf32>
    %c6 = arith.constant 6 : index
    %c0_67 = arith.constant 0 : index
    %149 = vector.load %arg8[%c6, %c0_67] : memref<24x128xf32, #tpu.memory_space<vmem>>, vector<1x16xf32>
    %150 = vector.broadcast %149 : vector<1x16xf32> to vector<64x16xf32>
    %151 = arith.addf %148, %150 : vector<64x16xf32>
    %152 = arith.addf %151, %11 : vector<64x16xf32>
    %153 = arith.truncf %152 : vector<64x16xf32> to vector<64x16xbf16>
    %c0_68 = arith.constant 0 : index
    %c0_69 = arith.constant 0 : index
    %154 = vector.load %arg7[%c0_68, %c0_69] : memref<16x32xbf16, #tpu.memory_space<vmem>>, vector<16x32xbf16>
    %cst_70 = arith.constant dense<0.000000e+00> : vector<64x32xf32>
    %155 = tpu.matmul %153, %154, %cst_70 {dimension_numbers = #tpu.dot_dimension_numbers<[1], [0], [0], [1], [0, 0, 1, 1], [], []>} : vector<64x16xbf16>, vector<16x32xbf16>, vector<64x32xf32> -> vector<64x32xf32>
    %c7_71 = arith.constant 7 : index
    %c0_72 = arith.constant 0 : index
    %156 = vector.load %arg8[%c7_71, %c0_72] : memref<24x128xf32, #tpu.memory_space<vmem>>, vector<1x32xf32>
    %157 = vector.broadcast %156 : vector<1x32xf32> to vector<64x32xf32>
    %158 = arith.addf %155, %157 : vector<64x32xf32>
    %159 = arith.negf %158 : vector<64x32xf32>
    %160 = math.exp %159 : vector<64x32xf32>
    %cst_73 = arith.constant 1.000000e+00 : f32
    %161 = vector.broadcast %cst_73 : f32 to vector<64x32xf32>
    %162 = arith.addf %161, %160 : vector<64x32xf32>
    %163 = arith.divf %161, %162 : vector<64x32xf32>
    %164 = arith.mulf %158, %163 : vector<64x32xf32>
    %cst_74 = arith.constant dense<0.000000e+00> : vector<32xf32>
    %165 = vector.multi_reduction <add>, %164, %cst_74 [0] : vector<64x32xf32> to vector<32xf32>
    %166 = vector.shape_cast %165 : vector<32xf32> to vector<1x32xf32>
    %cst_75 = arith.constant 6.400000e+01 : f32
    %167 = vector.broadcast %cst_75 : f32 to vector<1x32xf32>
    %168 = arith.divf %166, %167 : vector<1x32xf32>
    %c8_76 = arith.constant 8 : index
    %c0_77 = arith.constant 0 : index
    %169 = vector.load %arg8[%c8_76, %c0_77] : memref<24x128xf32, #tpu.memory_space<vmem>>, vector<1x32xf32>
    %170 = arith.mulf %168, %169 : vector<1x32xf32>
    %cst_78 = arith.constant dense<0.000000e+00> : vector<1xf32>
    %171 = vector.multi_reduction <add>, %170, %cst_78 [1] : vector<1x32xf32> to vector<1xf32>
    %172 = vector.shape_cast %171 : vector<1xf32> to vector<1x1xf32>
    %c9_79 = arith.constant 9 : index
    %c0_80 = arith.constant 0 : index
    %173 = vector.load %arg8[%c9_79, %c0_80] : memref<24x128xf32, #tpu.memory_space<vmem>>, vector<1x1xf32>
    %174 = arith.addf %172, %173 : vector<1x1xf32>
    %175 = vector.shape_cast %174 : vector<1x1xf32> to vector<1x1xf32>
    %176 = vector.broadcast %175 : vector<1x1xf32> to vector<1x128xf32>
    %c0_81 = arith.constant 0 : index
    %c0_82 = arith.constant 0 : index
    %177 = vector.load %arg9[%c0_81, %c0_82] : memref<1x128xf32, #tpu.memory_space<vmem>>, vector<1x128xf32>
    tpu.vector_store %arg9[%c0_81, %c0_82], %176 {strides = array<i32>} : memref<1x128xf32, #tpu.memory_space<vmem>>, vector<1x128xf32>,
    return
  }
  func.func @transform_0(%arg0: i32) -> (i32, i32) {
    %c0_i32 = arith.constant 0 : i32
    %c0_i32_0 = arith.constant 0 : i32
    %c0_i32_1 = arith.constant 0 : i32
    return %c0_i32, %c0_i32_0 : i32, i32
  }
  func.func @transform_1(%arg0: i32) -> (i32, i32) {
    %c0_i32 = arith.constant 0 : i32
    %c0_i32_0 = arith.constant 0 : i32
    %c0_i32_1 = arith.constant 0 : i32
    return %c0_i32, %c0_i32_0 : i32, i32
  }
  func.func @transform_2(%arg0: i32) -> (i32, i32) {
    %c0_i32 = arith.constant 0 : i32
    %c0_i32_0 = arith.constant 0 : i32
    %c0_i32_1 = arith.constant 0 : i32
    return %c0_i32, %c0_i32_0 : i32, i32
  }
  func.func @transform_3(%arg0: i32) -> (i32, i32) {
    %c0_i32 = arith.constant 0 : i32
    %c0_i32_0 = arith.constant 0 : i32
    %c0_i32_1 = arith.constant 0 : i32
    return %c0_i32, %c0_i32_0 : i32, i32
  }
  func.func @transform_4(%arg0: i32) -> (i32, i32) {
    %c0_i32 = arith.constant 0 : i32
    %c0_i32_0 = arith.constant 0 : i32
    %c0_i32_1 = arith.constant 0 : i32
    return %c0_i32, %c0_i32_0 : i32, i32
  }
  func.func @transform_5(%arg0: i32) -> (i32, i32) {
    %c0_i32 = arith.constant 0 : i32
    %c0_i32_0 = arith.constant 0 : i32
    %c0_i32_1 = arith.constant 0 : i32
    return %c0_i32, %c0_i32_0 : i32, i32
  }
  func.func @transform_6(%arg0: i32) -> (i32, i32) {
    %c0_i32 = arith.constant 0 : i32
    %c0_i32_0 = arith.constant 0 : i32
    %c0_i32_1 = arith.constant 0 : i32
    return %c0_i32, %c0_i32_0 : i32, i32
  }
  func.func @transform_7(%arg0: i32) -> (i32, i32) {
    %c0_i32 = arith.constant 0 : i32
    %c0_i32_0 = arith.constant 0 : i32
    %c0_i32_1 = arith.constant 0 : i32
    return %c0_i32, %c0_i32_0 : i32, i32
  }
  func.func @transform_8(%arg0: i32) -> (i32, i32) {
    %c0_i32 = arith.constant 0 : i32
    %c0_i32_0 = arith.constant 0 : i32
    %c0_i32_1 = arith.constant 0 : i32
    return %c0_i32, %c0_i32_0 : i32, i32
  }
}

</mosaic_0001>

<bundles_post_ra>
// kernel: efficientnet_regressor_forward.1
= control target key start
LH: loop header
LB: loop body
LE: loop exit
PB: predicated region body
PF: predicated region fallthrough
CT: control target
= control target key end

     0   :  { %vm92_vm0 = vcmask 1044480   ;;  %vm93_vm1 = vcmask 1045504   ;;  %v1717_v1 = vmov 65535   ;;  %vm79_vm2 = vcmask 220160   ;;  %s2429_s0 = inlined_call_operand.vmem [shape: bf16[64,27], index: 0, kind: input, shape index: {}]   ;;  %s2430_s1 = inlined_call_operand.vmem [shape: bf16[27,16], index: 1, kind: input, shape index: {}]   ;;  %s2431_s2 = inlined_call_operand.vmem [shape: bf16[16,64], index: 2, kind: input, shape index: {}]   ;;  %s2432_s3 = inlined_call_operand.vmem [shape: bf16[64,4], index: 3, kind: input, shape index: {}]   ;;  %s2433_s4 = inlined_call_operand.vmem [shape: bf16[4,64], index: 4, kind: input, shape index: {}]   ;;  %s2434_s5 = inlined_call_operand.vmem [shape: bf16[64,16], index: 5, kind: input, shape index: {}]   ;;  %s2435_s6 = inlined_call_operand.vmem [shape: bf16[16,32], index: 6, kind: input, shape index: {}]   ;;  %s2436_s7 = inlined_call_operand.vmem [shape: f32[24,128], index: 7, kind: input, shape index: {}]   ;;  %s2437_s8 = inlined_call_operand.hbm [shape: f32[1,128], index: 8, kind: output, shape index: {}]  }
   0x1   :  { %v1543_v0 = vld [vmem:[%s2430_s1 + $0x8] sm:$0x3f]   ;;  %v94_v2 = vsel %vm92_vm0, 4294967295, %v1717_v1  ;;  %v1545_v3 = vld [vmem:[%s2429_s0] sm:$0xff]   ;;  %v1547_v8 = vld [vmem:[%s2429_s0 + $0x10] sm:$0xff]  }
   0x2   :  { %v95_v4 = vsel %vm93_vm1, %v94_v2, 0  ;;  %v1544_v6 = vld [vmem:[%s2430_s1] sm:$0xff]   ;;  %1475 = vmatprep.mubr.msk.bf16.mxu0 %vm79_vm2, %v1545_v3  ;;  %v1546_v7 = vld [vmem:[%s2429_s0 + $0x8] sm:$0xff]  }
   0x3   :  { %v97_v5 = vand.u32 %v1543_v0, %v95_v4 }
   0x5   :  { %1471 = vmatprep.subr.bf16.mxu0 %v97_v5 }
   0x6   :  { %1472 = vmatpush3.bf16.msra.mxu0 %v97_v5 }
   0x7   :  { %1473 = vmatprep.subr.bf16.mxu0 %v1544_v6 }
   0xa   :  { %1474 = vmatpush3.bf16.msra.mxu0 %v1544_v6 }
   0xb   :  { %13 = vsyncpa [#allocation4], 0  ;;  %v1548_v9 = vld [vmem:[%s2429_s0 + $0x18] sm:$0xff]   ;;  %v1549_v10 = vld [vmem:[%s2431_s2] sm:$0xff]   ;;  %vm237_vm3 = vcmask 130048   ;;  %vm371_vm4 = vcmask 523264  }
   0xc   :  { %1483 = vmatprep.subr.bf16.mxu1 %v1549_v10  ;;  %v1357_v11 = vld [vmem:[%s2436_s7] ss:$0 sm:$0xff]  ;;  %vm1719_vm5 = vmmov 0   ;;  %s1721_s2 = smov [#allocation3]  }
   0xd   :  { %1476 = vmatmul.mubr.msk.bf16.vlgmr.msra.gmra.mxu0 %vm79_vm2, %v1546_v7  ;;  %1484 = vmatpush3.bf16.msra.mxu1 %v1549_v10  ;;  %v1551_v10 = vld [vmem:[%s2432_s3 + $0x10] sm:$0xff]   ;;  %s1349_s20 = sshll.u32 %s1721_s2, 4  ;;  %s1350_s20 = int_to_ptr.vmem [resolvable:$true] %s1349_s20 }
   0xe   :  { %1479 = vmatprep.mubr.msk.bf16.mxu0 %vm79_vm2, %v1547_v8  ;;  %v1718_v8 = vmov 0.0   ;;  %s1695_s21 = scalar_lea.vmem %s1350_s20, 16  ;;  %s1699_s22 = scalar_lea.vmem %s1350_s20, 32 }
   0xf   :  { %372 = vst.msk [vmem:[#allocation2] sm:$0xff] %vm371_vm4, %v1718_v8  ;;  %373 = vst.msk [vmem:[#allocation2 + $0x8] sm:$0xff] %vm371_vm4, %v1718_v8  ;;  %1493 = vmatprep.subr.bf16.mxu1 %v1718_v8  ;;  %1505 = vmatprep.subr.bf16.mxu0 %v1718_v8  ;;  %p1696_p0 = scmp.ne.s32.totalorder %s1350_s20, %s1695_s21  ;;  %p1700_p1 = scmp.lt.s32.totalorder %s1350_s20, %s1350_s20 }
  0x10   :  { %374 = vst.msk [vmem:[#allocation2 + $0x50] sm:$0xff] %vm371_vm4, %v1718_v8  ;;  %375 = vst.msk [vmem:[#allocation2 + $0x58] sm:$0xff] %vm371_vm4, %v1718_v8  ;;  %p1701_p2 = scmp.lt.s32.totalorder %s1699_s22, %s1695_s21 }
  0x12   :  { %p1702_p3 = por %p1701_p2, %p1700_p1 }
  0x14   :  { %p1703_p4 = pnand %p1702_p3, %p1696_p0 }
  0x15   :  { %1480 = vmatmul.mubr.msk.bf16.gmra.mxu0 %vm79_vm2, %v1548_v9  ;;  %v1550_v9 = vld [vmem:[%s2432_s3 + $0x18] sm:$0xff]  }
  0x16   :  { %1507 = vmatprep.mubr.msk.bf16.mxu0 %vm1719_vm5, %v1718_v8 }
  0xcd   :  { %v1477_v12 = vpop.f32.mrf.mxu0 }
  0xce   :  { %v142_v13 = vadd.f32 %v1477_v12, %v1357_v11  ;;  %v1553_v12 = vld [vmem:[%s2432_s3] sm:$0xff]  }
  0xcf   :  { %v133_v14 = vpop.f32.mrf.mxu0 }
  0xd0   :  { %v1370_v15 = vmul.f32 -1.442695, %v142_v13  ;;  %v134_v16 = vadd.f32 %v1357_v11, %v133_v14 }
  0xd1   :  { %v1478_v17 = vpop.f32.mrf.mxu0 }
  0xd2   :  { %v1368_v18 = vmul.f32 -1.442695, %v134_v16  ;;  %v145_v19 = vadd.f32 %v1478_v17, %v1357_v11  ;;  %1559 = vpow2.f32 %v1370_v15 }
  0xd3   :  { %v136_v20 = vpop.f32.mrf.mxu0 }
  0xd4   :  { %1561 = vpow2.f32 %v1368_v18  ;;  %v1371_v21 = vmul.f32 -1.442695, %v145_v19  ;;  %v137_v22 = vadd.f32 %v1357_v11, %v136_v20 }
  0xd5   :  { %v1481_v23 = vpop.f32.mrf.mxu0 }
  0xd6   :  { %1563 = vpow2.f32 %v1371_v21  ;;  %v1369_v24 = vmul.f32 -1.442695, %v137_v22  ;;  %v158_v25 = vadd.f32 %v1481_v23, %v1357_v11 }
  0xd7   :  { %v149_v26 = vpop.f32.mrf.mxu0 }
  0xd8   :  { %1565 = vpow2.f32 %v1369_v24  ;;  %v1374_v27 = vmul.f32 -1.442695, %v158_v25  ;;  %v150_v28 = vadd.f32 %v1357_v11, %v149_v26 }
  0xd9   :  { %v1482_v29 = vpop.f32.mrf.mxu0 }
  0xda   :  { %v1372_v30 = vmul.f32 -1.442695, %v150_v28  ;;  %v161_v31 = vadd.f32 %v1482_v29, %v1357_v11  ;;  %1567 = vpow2.f32 %v1374_v27 }
  0xdb   :  { %v152_v32 = vpop.f32.mrf.mxu0 }
  0xdc   :  { %1569 = vpow2.f32 %v1372_v30  ;;  %v1375_v33 = vmul.f32 -1.442695, %v161_v31  ;;  %v153_v34 = vadd.f32 %v1357_v11, %v152_v32  ;;  %v1552_v11 = vld [vmem:[%s2432_s3 + $0x8] sm:$0xff]  }
  0xde   :  { %1571 = vpow2.f32 %v1375_v33  ;;  %v1373_v35 = vmul.f32 -1.442695, %v153_v34 }
  0xdf   :  { %v1560_v36 = vpop.eup %1559 }
  0xe0   :  { %1573 = vpow2.f32 %v1373_v35  ;;  %v190_v40 = vadd.f32 1.0, %v1560_v36 }
  0xe1   :  { %v1562_v37 = vpop.eup %1561 }
  0xe2   :  { %v188_v38 = vadd.f32 1.0, %v1562_v37 }
  0xe3   :  { %v1564_v39 = vpop.eup %1563 }
  0xe4   :  { %v191_v41 = vadd.f32 1.0, %v1564_v39  ;;  %1575 = vrcp.f32 %v188_v38 }
  0xe5   :  { %v1566_v42 = vpop.eup %1565 }
  0xe6   :  { %1577 = vrcp.f32 %v191_v41  ;;  %v189_v43 = vadd.f32 1.0, %v1566_v42 }
  0xe7   :  { %1579 = vrcp.f32 %v190_v40  ;;  %v1568_v44 = vpop.eup %1567 }
  0xe8   :  { %1581 = vrcp.f32 %v189_v43  ;;  %v194_v48 = vadd.f32 1.0, %v1568_v44 }
  0xe9   :  { %v1570_v45 = vpop.eup %1569 }
  0xea   :  { %v192_v46 = vadd.f32 1.0, %v1570_v45 }
  0xeb   :  { %v1572_v47 = vpop.eup %1571 }
  0xec   :  { %v195_v49 = vadd.f32 1.0, %v1572_v47  ;;  %1583 = vrcp.f32 %v192_v46 }
  0xed   :  { %v1574_v50 = vpop.eup %1573 }
  0xee   :  { %1585 = vrcp.f32 %v195_v49  ;;  %v193_v51 = vadd.f32 1.0, %v1574_v50  ;;  %v384_v49 = vlaneseq }
  0xef   :  { %1587 = vrcp.f32 %v194_v48 }
  0xf0   :  { %1589 = vrcp.f32 %v193_v51 }
  0xf1   :  { %v1576_v52 = vpop.eup %1575 }
  0xf2   :  { %v1793_v57 = vmul.f32 %v1576_v52, %v134_v16 }
  0xf3   :  { %v1578_v53 = vpop.eup %1577 }
  0xf4   :  { %v1580_v54 = vpop.eup %1579  ;;  %v1791_v56 = vmul.f32 %v1578_v53, %v145_v19  ;;  %2451 = vst [vmem:[#allocation7_spill] sm:$0xff] %v1793_v57  ;;  %v1850_v53 = vshrl.u32 %v384_v49, 7 }
  0xf5   :  { %v1582_v55 = vpop.eup %1581  ;;  %v1797_v59 = vmul.f32 %v1580_v54, %v142_v13  ;;  %v1376_v13 = vld [vmem:[%s2436_s7 + $0x1] ss:$0 sm:$0xff] }
  0xf6   :  { %2450 = vst [vmem:[#allocation6_spill] sm:$0xff] %v1791_v56  ;;  %v1795_v58 = vmul.f32 %v1582_v55, %v137_v22  ;;  %2458 = vst [vmem:[#allocation14_spill] sm:$0xff] %v1850_v53 }
  0xf7   :  { %2453 = vst [vmem:[#allocation9_spill] sm:$0xff] %v1797_v59  ;;  %v221_v61 = vpack.c.bf16 %v1791_v56, %v1797_v59 }
  0xf8   :  { %2452 = vst [vmem:[#allocation8_spill] sm:$0xff] %v1795_v58  ;;  %v220_v60 = vpack.c.bf16 %v1795_v58, %v1793_v57 }
  0xf9   :  { %v1584_v62 = vpop.eup %1583 }
  0xfa   :  { %1485 = vmatprep.mubr.msk.bf16.mxu1 %vm237_vm3, %v220_v60  ;;  %v1807_v3 = vmul.f32 %v1584_v62, %v150_v28 }
  0xfb   :  { %v1586_v63 = vpop.eup %1585  ;;  %1486 = vmatmul.mubr.msk.bf16.vlgmr.msra.gmra.mxu1 %vm237_vm3, %v221_v61  ;;  %v397_v61 = vand.u32 7, %v1850_v53 }
  0xfc   :  { %v1588_v0 = vpop.eup %1587  ;;  %v1805_v2 = vmul.f32 %v1586_v63, %v161_v31  ;;  %2455 = vst [vmem:[#allocation11_spill] sm:$0xff] %v1807_v3  ;;  %1494 = vmatpush3.bf16.msra.mxu1 %v1550_v9  ;;  %v386_v63 = vadd.s32 8, %v1850_v53  ;;  %v388_v9 = vadd.s32 24, %v1850_v53 }
  0xfd   :  { %v1590_v1 = vpop.eup %1589  ;;  %v1811_v5 = vmul.f32 %v1588_v0, %v158_v25  ;;  %1495 = vmatprep.subr.bf16.mxu1 %v1718_v8  ;;  %vm1862_vm6 = vcmp.ge.s32.totalorder %v397_v61, 1  ;;  %vm1896_vm8 = vcmp.le.s32.totalorder %v397_v61, 6 }
  0xfe   :  { %2454 = vst [vmem:[#allocation10_spill] sm:$0xff] %v1805_v2  ;;  %v1809_v4 = vmul.f32 %v1590_v1, %v153_v34 }
  0xff   :  { %2457 = vst [vmem:[#allocation13_spill] sm:$0xff] %v1811_v5  ;;  %v223_v7 = vpack.c.bf16 %v1805_v2, %v1811_v5 }
 0x100   :  { %2456 = vst [vmem:[#allocation12_spill] sm:$0xff] %v1809_v4  ;;  %v222_v6 = vpack.c.bf16 %v1809_v4, %v1807_v3  ;;  %1496 = vmatpush3.bf16.msra.mxu1 %v1551_v10  ;;  %v389_v10 = vadd.s32 32, %v1850_v53 }
 0x101   :  { %1497 = vmatprep.subr.bf16.mxu1 %v1718_v8 }
 0x102   :  { %1489 = vmatprep.mubr.msk.bf16.mxu1 %vm237_vm3, %v222_v6  ;;  %v387_v6 = vadd.s32 16, %v1850_v53 }
 0x103   :  { %1490 = vmatmul.mubr.msk.bf16.gmra.mxu1 %vm237_vm3, %v223_v7  ;;  %v1858_v7 = vadd.s32 56, %v1850_v53 }
 0x104   :  { %1501 = vmatprep.mubr.msk.bf16.mxu1 %vm1719_vm5, %v1718_v8  ;;  %1498 = vmatpush3.bf16.msra.mxu1 %v1552_v11 }
 0x105   :  { %1499 = vmatprep.subr.bf16.mxu1 %v1718_v8 }
 0x108   :  { %1500 = vmatpush3.bf16.msra.mxu1 %v1553_v12  ;;  %v505_v12 = vld [vmem:[#allocation2 + $0x7] sm:$0xff] }
 0x1bb   :  { %v1487_v14 = vpop.f32.mrf.mxu1 }
 0x1bc   :  { %v293_v15 = vadd.f32 %v1487_v14, %v1376_v13 }
 0x1bd   :  { %v284_v16 = vpop.f32.mrf.mxu1 }
 0x1be   :  { %v1384_v17 = vmul.f32 -1.442695, %v293_v15  ;;  %v285_v18 = vadd.f32 %v1376_v13, %v284_v16  ;;  %v1870_v16 = vld [vmem:[%s2436_s7 + $0xb] ss:$0 sm:$0xff] }
 0x1bf   :  { %v1488_v19 = vpop.f32.mrf.mxu1 }
 0x1c0   :  { %1591 = vpow2.f32 %v1384_v17  ;;  %v1382_v20 = vmul.f32 -1.442695, %v285_v18  ;;  %v296_v21 = vadd.f32 %v1488_v19, %v1376_v13  ;;  %v1875_v19 = vld [vmem:[%s2436_s7 + $0xa] ss:$0 sm:$0xff] }
 0x1c1   :  { %v287_v22 = vpop.f32.mrf.mxu1 }
 0x1c2   :  { %1593 = vpow2.f32 %v1382_v20  ;;  %v1385_v23 = vmul.f32 -1.442695, %v296_v21  ;;  %v288_v24 = vadd.f32 %v1376_v13, %v287_v22  ;;  %v513_v22 = vsel %vm1862_vm6, %v505_v12, 0.0 }
 0x1c3   :  { %v1491_v25 = vpop.f32.mrf.mxu1 }
 0x1c4   :  { %1595 = vpow2.f32 %v1385_v23  ;;  %v1383_v26 = vmul.f32 -1.442695, %v288_v24  ;;  %v1838_v27 = vadd.f32 %v1491_v25, %v1376_v13  ;;  %v542_v23 = vld [vmem:[#allocation2 + $0x8] sm:$0xff]  ;;  %v418_v25 = vand.u32 7, %v388_v9 }
 0x1c5   :  { %v300_v28 = vpop.f32.mrf.mxu1 }
 0x1c6   :  { %1597 = vpow2.f32 %v1383_v26  ;;  %v1388_v29 = vmul.f32 -1.442695, %v1838_v27  ;;  %v1841_v30 = vadd.f32 %v1376_v13, %v300_v28  ;;  %v425_v26 = vand.u32 7, %v389_v10 }
 0x1c7   :  { %v1492_v31 = vpop.f32.mrf.mxu1  ;;  %vm1926_vm12 = vcmp.ge.s32.totalorder %v418_v25, 1  ;;  %vm1945_vm15 = vcmp.le.s32.totalorder %v418_v25, 6 }
 0x1c8   :  { %1599 = vpow2.f32 %v1388_v29  ;;  %v1386_v32 = vmul.f32 -1.442695, %v1841_v30  ;;  %v1844_v33 = vadd.f32 %v1492_v31, %v1376_v13  ;;  %v1889_v31 = vadd.s32 40, %v1850_v53 }
 0x1c9   :  { %v303_v37 = vpop.f32.mrf.mxu1  ;;  %vm1930_vm13 = vcmp.ge.s32.totalorder %v425_v26, 1  ;;  %vm1961_vm0 = vcmp.le.s32.totalorder %v425_v26, 6 }
 0x1ca   :  { %1601 = vpow2.f32 %v1386_v32  ;;  %v1389_v34 = vmul.f32 -1.442695, %v1844_v33  ;;  %v1847_v41 = vadd.f32 %v1376_v13, %v303_v37  ;;  %v404_v13 = vand.u32 7, %v386_v63 }
 0x1cb   :  { %v526_v37 = vmul.f32 %v1875_v19, %v513_v22 }
 0x1cc   :  { %1603 = vpow2.f32 %v1389_v34  ;;  %v1387_v46 = vmul.f32 -1.442695, %v1847_v41  ;;  %vm1882_vm7 = vcmp.ge.s32.totalorder %v404_v13, 1  ;;  %v1894_v34 = vld [vmem:[%s2436_s7 + $0xe] ss:$0 sm:$0xff]  ;;  %vm1914_vm10 = vcmp.le.s32.totalorder %v404_v13, 6 }
 0x1cd   :  { %v1592_v35 = vpop.eup %1591 }
 0x1ce   :  { %v341_v36 = vadd.f32 1.0, %v1592_v35 }
 0x1cf   :  { %v1594_v38 = vpop.eup %1593 }
 0x1d0   :  { %1605 = vrcp.f32 %v341_v36  ;;  %v339_v39 = vadd.f32 1.0, %v1594_v38  ;;  %v1901_v36 = vadd.s32 48, %v1850_v53  ;;  %v1908_v38 = vld [vmem:[%s2436_s7 + $0x11] ss:$0 sm:$0xff] }
 0x1d1   :  { %v1596_v40 = vpop.eup %1595 }
 0x1d2   :  { %1607 = vrcp.f32 %v339_v39  ;;  %v342_v42 = vadd.f32 1.0, %v1596_v40 }
 0x1d3   :  { %v1598_v43 = vpop.eup %1597 }
 0x1d4   :  { %1609 = vrcp.f32 %v342_v42  ;;  %v340_v44 = vadd.f32 1.0, %v1598_v43 }
 0x1d5   :  { %v1600_v45 = vpop.eup %1599 }
 0x1d6   :  { %1611 = vrcp.f32 %v340_v44  ;;  %v345_v47 = vadd.f32 1.0, %v1600_v45  ;;  %v720_v45 = vld [vmem:[#allocation2 + $0x50] sm:$0xff] }
 0x1d7   :  { %v1602_v48 = vpop.eup %1601 }
 0x1d8   :  { %1613 = vrcp.f32 %v345_v47  ;;  %v343_v50 = vadd.f32 1.0, %v1602_v48 }
 0x1d9   :  { %v1604_v51 = vpop.eup %1603  ;;  %1615 = vpow2.f32 %v1387_v46 }
 0x1da   :  { %1617 = vrcp.f32 %v343_v50  ;;  %v346_v52 = vadd.f32 1.0, %v1604_v51 }
 0x1dc   :  { %1619 = vrcp.f32 %v346_v52 }
 0x1dd   :  { %v1606_v54 = vpop.eup %1605 }
 0x1de   :  { %v365_v55 = vmul.f32 %v1606_v54, %v293_v15 }
 0x1df   :  { %v1608_v60 = vpop.eup %1607 }
 0x1e0   :  { %378 = vst.msk [vmem:[#allocation2 + $0x20] sm:$0xff] %vm371_vm4, %v365_v55  ;;  %v363_v62 = vmul.f32 %v1608_v60, %v285_v18  ;;  %v411_v18 = vand.u32 7, %v387_v6  ;;  %v2438_v55 = vand.u32 7, %v1889_v31 }
 0x1e1   :  { %v1610_v0 = vpop.eup %1609 }
 0x1e2   :  { %376 = vst.msk [vmem:[#allocation2 + $0x10] sm:$0xff] %vm371_vm4, %v363_v62  ;;  %v366_v1 = vmul.f32 %v1610_v0, %v296_v21  ;;  %v2439_v21 = vand.u32 7, %v1858_v7  ;;  %vm1910_vm9 = vcmp.ge.s32.totalorder %v411_v18, 1  ;;  %vm1941_vm14 = vcmp.le.s32.totalorder %v411_v18, 6 }
 0x1e3   :  { %v1612_v8 = vpop.eup %1611  ;;  %vm2003_vm1 = vcmp.ge.s32.totalorder %v2438_v55, 1 }
 0x1e4   :  { %379 = vst.msk [vmem:[#allocation2 + $0x28] sm:$0xff] %vm371_vm4, %v366_v1  ;;  %v364_v14 = vmul.f32 %v1612_v8, %v288_v24  ;;  %vm1922_vm11 = vcmp.le.s32.totalorder %v2439_v21, 6  ;;  %v1969_v8 = vmul.f32 %v1908_v38, %v720_v45  ;;  %v2020_v45 = vld [vmem:[%s2436_s7 + $0xc] ss:$0 sm:$0xff] }
 0x1e5   :  { %v1614_v15 = vpop.eup %1613 }
 0x1e6   :  { %v1616_v17 = vpop.eup %1615  ;;  %377 = vst.msk [vmem:[#allocation2 + $0x18] sm:$0xff] %vm371_vm4, %v364_v14  ;;  %v369_v20 = vmul.f32 %v1614_v15, %v1838_v27  ;;  %v742_v27 = vld [vmem:[#allocation2 + $0x51] sm:$0xff] }
 0x1e7   :  { %v1618_v24 = vpop.eup %1617  ;;  %v344_v44 = vadd.f32 1.0, %v1616_v17  ;;  %v545_v46 = vld [vmem:[#allocation2 + $0x20] sm:$0xff]  ;;  %v750_v49 = vsel %vm1922_vm11, %v742_v27, 0.0 }
 0x1e8   :  { %382 = vst.msk [vmem:[#allocation2 + $0x40] sm:$0xff] %vm371_vm4, %v369_v20  ;;  %v367_v29 = vmul.f32 %v1618_v24, %v1841_v30  ;;  %v555_v30 = vmul.f32 %v1870_v16, %v542_v23  ;;  %v558_v9 = vmul.f32 %v1870_v16, %v545_v46  ;;  %v646_v10 = vmul.f32 %v1894_v34, %v545_v46 }
 0x1e9   :  { %v1620_v32 = vpop.eup %1619  ;;  %v543_v50 = vld [vmem:[#allocation2 + $0x10] sm:$0xff]  ;;  %1621 = vrcp.f32 %v344_v44  ;;  %v1979_v15 = vmul.f32 %v1908_v38, %v545_v46 }
 0x1ea   :  { %380 = vst.msk [vmem:[#allocation2 + $0x30] sm:$0xff] %vm371_vm4, %v367_v29  ;;  %v370_v42 = vmul.f32 %v1620_v32, %v1844_v33  ;;  %v1937_v33 = vld [vmem:[%s2436_s7 + $0x12] ss:$0 sm:$0xff]  ;;  %v1966_v6 = vadd.f32 %v555_v30, %v526_v37  ;;  %v1982_v17 = vmul.f32 %v1870_v16, %v543_v50  ;;  %v1985_v18 = vmul.f32 %v1894_v34, %v543_v50 }
 0x1eb   :  { %v1949_v54 = vld [vmem:[#allocation2 + $0x27] sm:$0xff]  ;;  %v1953_v60 = vld [vmem:[#allocation2 + $0xf] sm:$0xff]  ;;  %v1976_v14 = vmul.f32 %v1937_v33, %v750_v49 }
 0x1ec   :  { %383 = vst.msk [vmem:[#allocation2 + $0x48] sm:$0xff] %vm371_vm4, %v370_v42  ;;  %v574_v12 = vld [vmem:[#allocation2 + $0x21] sm:$0xff]  ;;  %v514_v22 = vsel %vm1882_vm7, %v1953_v60, 0.0  ;;  %v517_v23 = vsel %vm1930_vm13, %v1949_v54, 0.0  ;;  %v2014_v42 = vld [vmem:[#allocation2 + $0x9] sm:$0xff]  ;;  %v612_v46 = vsel %vm1926_vm12, %v1949_v54, 0.0 }
 0x1ed   :  { %v1955_v61 = vld [vmem:[#allocation2 + $0x17] sm:$0xff]  ;;  %v1957_v62 = vld [vmem:[#allocation2 + $0x1f] sm:$0xff]  ;;  %2481 = vst [vmem:[#allocation15_spill] sm:$0xff] %v1976_v14  ;;  %v546_v20 = vld [vmem:[#allocation2 + $0x28] sm:$0xff]  ;;  %v582_v27 = vsel %vm1945_vm15, %v574_v12, 0.0  ;;  %v2029_v50 = vmul.f32 %v1875_v19, %v514_v22  ;;  %v663_v3 = vsel %vm1941_vm14, %v574_v12, 0.0 }
 0x1ee   :  { %v1959_v63 = vld [vmem:[#allocation2 + $0x18] sm:$0xff]  ;;  %v515_v24 = vsel %vm1910_vm9, %v1955_v61, 0.0  ;;  %v516_v25 = vsel %vm1926_vm12, %v1957_v62, 0.0  ;;  %v559_v44 = vmul.f32 %v1870_v16, %v546_v20  ;;  %v611_v49 = vsel %vm1910_vm9, %v1957_v62, 0.0  ;;  %v2044_v22 = vld [vmem:[%s2436_s7 + $0xf] ss:$0 sm:$0xff] }
 0x1ef   :  { %v1973_v13 = vld [vmem:[#allocation2 + $0x19] sm:$0xff]  ;;  %v557_v26 = vmul.f32 %v1870_v16, %v1959_v63  ;;  %v528_v32 = vmul.f32 %v1875_v19, %v515_v24  ;;  %v529_v37 = vmul.f32 %v1875_v19, %v516_v25  ;;  %v530_v24 = vmul.f32 %v1875_v19, %v517_v23  ;;  %v2035_v25 = vld [vmem:[%s2436_s7 + $0xd] ss:$0 sm:$0xff]  ;;  %v572_v21 = vld [vmem:[#allocation2 + $0x11] sm:$0xff] }
 0x1f0   :  { %v581_v30 = vsel %vm1941_vm14, %v1973_v13, 0.0  ;;  %v595_v4 = vmul.f32 %v2020_v45, %v582_v27  ;;  %v2058_v27 = vld [vmem:[%s2436_s7 + $0x10] ss:$0 sm:$0xff]  ;;  %v625_v2 = vmul.f32 %v2035_v25, %v612_v46  ;;  %v580_v39 = vsel %vm1914_vm10, %v572_v21, 0.0 }
 0x1f1   :  { %v565_v55 = vadd.f32 %v557_v26, %v528_v32  ;;  %v566_v1 = vadd.f32 %v558_v9, %v529_v37  ;;  %v594_v5 = vmul.f32 %v2020_v45, %v581_v30  ;;  %v693_v26 = vsel %vm1910_vm9, %v1949_v54, 0.0  ;;  %v575_v23 = vld [vmem:[#allocation2 + $0x29] sm:$0xff] }
 0x1f2   :  { %v744_v32 = vsel %vm1914_vm10, %v574_v12, 0.0  ;;  %v624_v30 = vmul.f32 %v2035_v25, %v611_v49  ;;  %v647_v9 = vmul.f32 %v1894_v34, %v546_v20  ;;  %v567_v59 = vadd.f32 %v559_v44, %v530_v24  ;;  %v510_v49 = vld [vmem:[#allocation2 + $0x2f] sm:$0xff] }
 0x1f3   :  { %v602_v37 = vadd.f32 %v594_v5, %v565_v55  ;;  %v603_v54 = vadd.f32 %v595_v4, %v566_v1  ;;  %v728_v58 = vmul.f32 %v1908_v38, %v546_v20  ;;  %v610_v57 = vsel %vm1882_vm7, %v1955_v61, 0.0 }
 0x1f4   :  { %v676_v5 = vmul.f32 %v2044_v22, %v663_v3  ;;  %v706_v55 = vmul.f32 %v2058_v27, %v693_v26  ;;  %v2074_v46 = vmul.f32 %v1937_v33, %v744_v32  ;;  %v583_v56 = vsel %vm1961_vm0, %v575_v23, 0.0 }
 0x1f5   :  { %v632_v12 = vadd.f32 %v624_v30, %v602_v37  ;;  %v593_v4 = vmul.f32 %v2020_v45, %v580_v39  ;;  %v661_v20 = vsel %vm1896_vm8, %v572_v21, 0.0  ;;  %v662_v44 = vsel %vm1914_vm10, %v1973_v13, 0.0  ;;  %v547_v39 = vld [vmem:[#allocation2 + $0x30] sm:$0xff] }
 0x1f6   :  { %v2085_v3 = vmul.f32 %v2035_v25, %v610_v57  ;;  %v2089_v24 = vmul.f32 %v1894_v34, %v1959_v63  ;;  %v691_v26 = vsel %vm1862_vm6, %v1955_v61, 0.0  ;;  %v633_v32 = vadd.f32 %v625_v2, %v603_v54  ;;  %v1622_v40 = vpop.eup %1621 }
 0x1f7   :  { %v654_v1 = vadd.f32 %v646_v10, %v632_v12  ;;  %v2484_v10 = vand.u32 7, %v1858_v7  ;;  %v692_v57 = vsel %vm1882_vm7, %v1957_v62, 0.0  ;;  %v518_v30 = vsel %vm2003_vm1, %v510_v49, 0.0 }
 0x1f8   :  { %v596_v12 = vmul.f32 %v2020_v45, %v583_v56  ;;  %v2487_v2 = vand.u32 7, %v1901_v36  ;;  %v2119_v28 = vmul.f32 %v2044_v22, %v661_v20  ;;  %v2122_v62 = vmul.f32 %v2044_v22, %v662_v44 }
 0x1f9   :  { %vm2096_vm2 = vcmp.ge.s32.totalorder %v2484_v10, 1  ;;  %v684_v37 = vadd.f32 %v676_v5, %v654_v1  ;;  %v664_v56 = vsel %vm1945_vm15, %v575_v23, 0.0  ;;  %v745_v5 = vsel %vm1941_vm14, %v575_v23, 0.0  ;;  %v549_v10 = vld [vmem:[#allocation2 + $0x40] sm:$0xff] }
 0x1fa   :  { %vm2108_vm5 = vcmp.ge.s32.totalorder %v2487_v2, 1  ;;  %v2490_v61 = vmov %v2487_v2  ;;  %v2129_v1 = vmul.f32 %v2058_v27, %v691_v26  ;;  %v743_v36 = vsel %vm1896_vm8, %v1973_v13, 0.0 }
 0x1fb   :  { %vm2114_vm9 = vcmp.le.s32.totalorder %v2490_v61, 6  ;;  %v655_v2 = vadd.f32 %v647_v9, %v633_v32  ;;  %v714_v20 = vadd.f32 %v706_v55, %v684_v37  ;;  %v2493_v61 = vand.u32 7, %v1889_v31 }
 0x1fc   :  { %v2141_v53 = vmul.f32 %v2058_v27, %v692_v57  ;;  %v531_v51 = vmul.f32 %v1875_v19, %v518_v30  ;;  %v560_v23 = vmul.f32 %v1870_v16, %v547_v39  ;;  %v613_v26 = vsel %vm1930_vm13, %v510_v49, 0.0 }
 0x1fd   :  { %vm2136_vm7 = vcmp.le.s32.totalorder %v2493_v61, 6  ;;  %v604_v13 = vadd.f32 %v596_v12, %v567_v59  ;;  %v677_v9 = vmul.f32 %v2044_v22, %v664_v56  ;;  %v736_v55 = vadd.f32 %v728_v58, %v714_v20  ;;  %v608_v20 = vld [vmem:[#allocation2 + $0x47] sm:$0xff] }
 0x1fe   :  { %v758_v31 = vmul.f32 %v1937_v33, %v745_v5  ;;  %v2151_v32 = vmul.f32 %v1908_v38, %v1959_v63  ;;  %v2154_v37 = vmul.f32 %v1937_v33, %v743_v36  ;;  %v2157_v57 = vmul.f32 %v1870_v16, %v549_v10  ;;  %v578_v63 = vld [vmem:[#allocation2 + $0x41] sm:$0xff] }
 0x1ff   :  { %v694_v30 = vsel %vm1926_vm12, %v510_v49, 0.0  ;;  %v2162_v59 = vmul.f32 %v1894_v34, %v549_v10  ;;  %v626_v58 = vmul.f32 %v2035_v25, %v613_v26  ;;  %v685_v12 = vadd.f32 %v677_v9, %v655_v2 }
 0x200   :  { %v766_v56 = vadd.f32 %v758_v31, %v736_v55  ;;  %v2166_v5 = vmul.f32 %v1908_v38, %v549_v10  ;;  %v368_v36 = vmul.f32 %v1622_v40, %v1847_v41  ;;  %v564_v61 = vadd.f32 %v1982_v17, %v2029_v50  ;;  %v638_v55 = vld [vmem:[#allocation2 + $0x48] sm:$0xff]  ;;  %v2193_v40 = vld [vmem:[%s2436_s7 + $0x2] ss:$0 sm:$0xff] }
 0x201   :  { %v2496_v47 = vsel %vm1896_vm8, %v2014_v42, 0.0  ;;  %v2176_v14 = vadd.f32 %v560_v23, %v531_v51  ;;  %v634_v2 = vadd.f32 %v626_v58, %v604_v13  ;;  %v648_v26 = vmul.f32 %v1894_v34, %v547_v39  ;;  %v2188_v50 = vld [vmem:[#allocation2 + $0x49] sm:$0xff] }
 0x202   :  { %v592_v49 = vmul.f32 %v2020_v45, %v2496_v47  ;;  %v707_v10 = vmul.f32 %v2058_v27, %v694_v30  ;;  %v729_v9 = vmul.f32 %v1908_v38, %v547_v39  ;;  %381 = vst.msk [vmem:[#allocation2 + $0x38] sm:$0xff] %vm371_vm4, %v368_v36  ;;  %v601_v17 = vadd.f32 %v593_v4, %v564_v61  ;;  %v690_v4 = vld [vmem:[#allocation2 + $0x4f] sm:$0xff]  ;;  %v2208_v30 = vld [vmem:[%s2436_s7 + $0x3] ss:$0 sm:$0xff] }
 0x203   :  { %v2497_v35 = vsel %vm1862_vm6, %v1953_v60, 0.0  ;;  %v586_v51 = vsel %vm1922_vm11, %v578_v63, 0.0  ;;  %v779_v11 = vmul.f32 %v2193_v40, %v766_v56  ;;  %v667_v60 = vsel %vm2114_vm9, %v578_v63, 0.0 }
 0x204   :  { %v600_v41 = vadd.f32 %v592_v49, %v1966_v6  ;;  %v622_v42 = vmul.f32 %v2035_v25, %v2497_v35  ;;  %v715_v39 = vadd.f32 %v707_v10, %v685_v12  ;;  %v616_v6 = vsel %vm2096_vm2, %v608_v20, 0.0 }
 0x205   :  { %v697_v23 = vsel %vm2108_vm5, %v608_v20, 0.0  ;;  %v631_v31 = vadd.f32 %v2085_v3, %v601_v17  ;;  %v656_v58 = vadd.f32 %v648_v26, %v634_v2  ;;  %v2211_v12 = vmul.f32 %v1894_v34, %v638_v55 }
 0x206   :  { %v630_v13 = vadd.f32 %v622_v42, %v600_v41  ;;  %v668_v56 = vsel %vm1922_vm11, %v2188_v50, 0.0  ;;  %v2217_v36 = vadd.f32 %v2208_v30, %v779_v11  ;;  %v599_v20 = vmul.f32 %v2020_v45, %v586_v51 }
 0x207   :  { %v748_v3 = vsel %vm2136_vm7, %v578_v63, 0.0  ;;  %v698_v47 = vsel %vm2096_vm2, %v690_v4, 0.0  ;;  %v629_v49 = vmul.f32 %v2035_v25, %v616_v6  ;;  %v680_v2 = vmul.f32 %v2044_v22, %v667_v60 }
 0x208   :  { %2498 = vst [vmem:[#allocation16_spill] sm:$0xff] %v2217_v36  ;;  %v652_v61 = vadd.f32 %v1985_v18, %v630_v13  ;;  %v2228_v43 = vmul.f32 %v2058_v27, %v697_v23  ;;  %v2231_v26 = vmul.f32 %v1908_v38, %v638_v55  ;;  %v737_v10 = vadd.f32 %v729_v9, %v715_v39 }
 0x209   :  { %v653_v41 = vadd.f32 %v2089_v24, %v631_v31  ;;  %v681_v63 = vmul.f32 %v2044_v22, %v668_v56  ;;  %v511_v17 = vld [vmem:[#allocation2 + $0x37] sm:$0xff]  ;;  %v512_v35 = vld [vmem:[#allocation2 + $0x3f] sm:$0xff]  ;;  %v711_v6 = vmul.f32 %v2058_v27, %v698_v47  ;;  %v2241_v4 = vmul.f32 %v1937_v33, %v748_v3 }
 0x20a   :  { %v548_v42 = vld [vmem:[#allocation2 + $0x38] sm:$0xff]  ;;  %v682_v51 = vadd.f32 %v2119_v28, %v652_v61  ;;  %v1403_v9 = vmul.f32 -1.442695, %v2217_v36  ;;  %v519_v24 = vsel %vm2108_vm5, %v511_v17, 0.0  ;;  %v520_v55 = vsel %vm2096_vm2, %v512_v35, 0.0 }
 0x20b   :  { %v561_v39 = vmul.f32 %v1870_v16, %v548_v42  ;;  %v576_v11 = vld [vmem:[#allocation2 + $0x31] sm:$0xff]  ;;  %v577_v60 = vld [vmem:[#allocation2 + $0x39] sm:$0xff]  ;;  %v614_v28 = vsel %vm2003_vm1, %v511_v17, 0.0  ;;  %v532_v23 = vmul.f32 %v1875_v19, %v519_v24  ;;  %v533_v13 = vmul.f32 %v1875_v19, %v520_v55 }
 0x20c   :  { %v584_v31 = vsel %vm2136_vm7, %v576_v11, 0.0  ;;  %v585_v56 = vsel %vm2114_vm9, %v577_v60, 0.0  ;;  %v615_v16 = vsel %vm2108_vm5, %v512_v35, 0.0  ;;  %v683_v61 = vadd.f32 %v2122_v62, %v653_v41 }
 0x20d   :  { %v597_v21 = vmul.f32 %v2020_v45, %v584_v31  ;;  %v598_v3 = vmul.f32 %v2020_v45, %v585_v56  ;;  %v569_v47 = vadd.f32 %v561_v39, %v532_v23  ;;  %v570_v24 = vadd.f32 %v2157_v57, %v533_v13 }
 0x20e   :  { %v627_v19 = vmul.f32 %v2035_v25, %v614_v28  ;;  %v628_v55 = vmul.f32 %v2035_v25, %v615_v16  ;;  %v665_v36 = vsel %vm1961_vm0, %v576_v11, 0.0  ;;  %v666_v45 = vsel %vm2136_vm7, %v577_v60, 0.0 }
 0x20f   :  { %v605_v18 = vadd.f32 %v597_v21, %v2176_v14  ;;  %v695_v7 = vsel %vm1930_vm13, %v511_v17, 0.0  ;;  %v606_v31 = vadd.f32 %v598_v3, %v569_v47  ;;  %v607_v62 = vadd.f32 %v599_v20, %v570_v24 }
 0x210   :  { %v649_v41 = vmul.f32 %v1894_v34, %v548_v42  ;;  %v678_v57 = vmul.f32 %v2044_v22, %v665_v36  ;;  %v679_v25 = vmul.f32 %v2044_v22, %v666_v45  ;;  %v696_v14 = vsel %vm2003_vm1, %v512_v35, 0.0 }
 0x211   :  { %v635_v39 = vadd.f32 %v627_v19, %v605_v18  ;;  %v708_v28 = vmul.f32 %v2058_v27, %v695_v7  ;;  %v636_v23 = vadd.f32 %v628_v55, %v606_v31  ;;  %v730_v13 = vmul.f32 %v1908_v38, %v548_v42 }
 0x212   :  { %v686_v44 = vadd.f32 %v678_v57, %v656_v58  ;;  %v746_v48 = vsel %vm1945_vm15, %v576_v11, 0.0  ;;  %v747_v34 = vsel %vm1961_vm0, %v577_v60, 0.0  ;;  %v637_v18 = vadd.f32 %v629_v49, %v607_v62 }
 0x213   :  { %v657_v20 = vadd.f32 %v649_v41, %v635_v39  ;;  %v759_v36 = vmul.f32 %v1937_v33, %v746_v48  ;;  %v709_v22 = vmul.f32 %v2058_v27, %v696_v14  ;;  %v658_v17 = vadd.f32 %v2162_v59, %v636_v23 }
 0x214   :  { %v716_v29 = vadd.f32 %v708_v28, %v686_v44  ;;  %v712_v35 = vadd.f32 %v2129_v1, %v682_v51  ;;  %v659_v38 = vadd.f32 %v2211_v12, %v637_v18  ;;  %v713_v52 = vadd.f32 %v2141_v53, %v683_v61 }
 0x215   :  { %v687_v58 = vadd.f32 %v679_v25, %v657_v20  ;;  %v767_v42 = vadd.f32 %v759_v36, %v737_v10  ;;  %v760_v0 = vmul.f32 %v1937_v33, %v747_v34  ;;  %v688_v60 = vadd.f32 %v680_v2, %v658_v17 }
 0x216   :  { %v738_v11 = vadd.f32 %v730_v13, %v716_v29  ;;  %v734_v56 = vadd.f32 %v2151_v32, %v712_v35  ;;  %v689_v49 = vadd.f32 %v681_v63, %v659_v38  ;;  %v735_v27 = vadd.f32 %v1979_v15, %v713_v52  ;;  %v2501_v38 = vld [vmem:[#allocation16_spill] sm:$0xff] }
 0x217   :  { %v717_v21 = vadd.f32 %v709_v22, %v687_v58  ;;  %v780_v59 = vmul.f32 %v2193_v40, %v767_v42  ;;  %v718_v1 = vadd.f32 %v2228_v43, %v688_v60  ;;  %1623 = vpow2.f32 %v1403_v9 }
 0x218   :  { %v764_v51 = vadd.f32 %v2154_v37, %v734_v56  ;;  %v768_v12 = vadd.f32 %v760_v0, %v738_v11  ;;  %v719_v53 = vadd.f32 %v711_v6, %v689_v49  ;;  %v765_v3 = vadd.f32 %v2074_v46, %v735_v27 }
 0x219   :  { %v739_v10 = vadd.f32 %v2166_v5, %v717_v21  ;;  %v2298_v2 = vadd.f32 %v2208_v30, %v780_v59  ;;  %v740_v32 = vadd.f32 %v2231_v26, %v718_v1  ;;  %v2499_v15 = vsel %vm2114_vm9, %v2188_v50, 0.0  ;;  %v2500_v50 = vld [vmem:[#allocation15_spill] sm:$0xff] }
 0x21a   :  { %v762_v43 = vmul.f32 %v1937_v33, %v2499_v15  ;;  %v777_v37 = vmul.f32 %v2193_v40, %v764_v51  ;;  %v781_v63 = vmul.f32 %v2193_v40, %v768_v12  ;;  %v741_v6 = vadd.f32 %v1969_v8, %v719_v53 }
 0x21b   :  { %v769_v5 = vadd.f32 %v2241_v4, %v739_v10  ;;  %v778_v46 = vmul.f32 %v2193_v40, %v765_v3  ;;  %v1404_v9 = vmul.f32 -1.442695, %v2298_v2  ;;  %vm968_vm6 = vcmask 1041408  }
 0x21c   :  { %v770_v16 = vadd.f32 %v762_v43, %v740_v32  ;;  %v790_v26 = vadd.f32 %v2208_v30, %v777_v37  ;;  %v794_v54 = vadd.f32 %v2208_v30, %v781_v63  ;;  %v771_v61 = vadd.f32 %v2500_v50, %v741_v6 }
 0x21d   :  { %v782_v33 = vmul.f32 %v2193_v40, %v769_v5  ;;  %v791_v47 = vadd.f32 %v2208_v30, %v778_v46  ;;  %1625 = vpow2.f32 %v1404_v9  ;;  %vm964_vm8 = vcmask 31744  }
 0x21e   :  { %v783_v8 = vmul.f32 %v2193_v40, %v770_v16  ;;  %v1401_v24 = vmul.f32 -1.442695, %v790_v26  ;;  %v1405_v4 = vmul.f32 -1.442695, %v794_v54  ;;  %v784_v19 = vmul.f32 %v2193_v40, %v771_v61 }
 0x21f   :  { %v795_v55 = vadd.f32 %v2208_v30, %v782_v33  ;;  %v1402_v45 = vmul.f32 -1.442695, %v791_v47 }
 0x220   :  { %v796_v7 = vadd.f32 %v2208_v30, %v783_v8  ;;  %1627 = vpow2.f32 %v1401_v24  ;;  %v797_v31 = vadd.f32 %v2208_v30, %v784_v19  ;;  %v962_v19 = vld [vmem:[%s2433_s4] sm:$0x3] }
 0x221   :  { %1629 = vpow2.f32 %v1402_v45  ;;  %v1406_v62 = vmul.f32 -1.442695, %v795_v55  ;;  %v886_v45 = vld [vmem:[%s2436_s7 + $0x4] sm:$0x1] }
 0x222   :  { %1631 = vpow2.f32 %v1405_v4  ;;  %v1407_v41 = vmul.f32 -1.442695, %v796_v7  ;;  %v1408_v57 = vmul.f32 -1.442695, %v797_v31 }
 0x223   :  { %1633 = vpow2.f32 %v1406_v62 }
 0x224   :  { %1635 = vpow2.f32 %v1407_v41  ;;  %v1624_v39 = vpop.eup %1623 }
 0x225   :  { %1637 = vpow2.f32 %v1408_v57  ;;  %v824_v25 = vadd.f32 1.0, %v1624_v39 }
 0x227   :  { %1639 = vrcp.f32 %v824_v25 }
 0x22a   :  { %v1626_v14 = vpop.eup %1625 }
 0x22b   :  { %v825_v40 = vadd.f32 1.0, %v1626_v14 }
 0x22d   :  { %v1628_v28 = vpop.eup %1627  ;;  %1641 = vrcp.f32 %v825_v40 }
 0x22e   :  { %v1630_v23 = vpop.eup %1629  ;;  %v822_v44 = vadd.f32 1.0, %v1628_v28 }
 0x22f   :  { %v1632_v13 = vpop.eup %1631  ;;  %v823_v48 = vadd.f32 1.0, %v1630_v23 }
 0x230   :  { %v1634_v30 = vpop.eup %1633  ;;  %v826_v20 = vadd.f32 1.0, %v1632_v13  ;;  %1643 = vrcp.f32 %v822_v44  ;;  %v1554_v44 = vld [vmem:[%s2434_s5 + $0x18] sm:$0xff]   ;;  %v1555_v13 = vld [vmem:[%s2434_s5 + $0x10] sm:$0xff]  }
 0x231   :  { %v1636_v34 = vpop.eup %1635  ;;  %v827_v36 = vadd.f32 1.0, %v1634_v30  ;;  %1645 = vrcp.f32 %v823_v48  ;;  %1511 = vmatprep.subr.bf16.mxu1 %v1554_v44  ;;  %v1556_v48 = vld [vmem:[%s2434_s5 + $0x8] sm:$0xff]   ;;  %v1557_v30 = vld [vmem:[%s2434_s5] sm:$0xff]  }
 0x232   :  { %v1638_v18 = vpop.eup %1637  ;;  %v828_v22 = vadd.f32 1.0, %v1636_v34  ;;  %1647 = vrcp.f32 %v826_v20  ;;  %v963_v20 = vld [vmem:[%s2436_s7 + $0x5] sm:$0x1] }
 0x233   :  { %1649 = vrcp.f32 %v827_v36  ;;  %v829_v29 = vadd.f32 1.0, %v1638_v18 }
 0x234   :  { %1651 = vrcp.f32 %v828_v22  ;;  %v1640_v17 = vpop.eup %1639 }
 0x235   :  { %1653 = vrcp.f32 %v829_v29  ;;  %v2323_v52 = vmul.f32 %v1640_v17, %v2501_v38  ;;  %v2502_v38 = vld [vmem:[#allocation14_spill] sm:$0xff] }
 0x237   :  { %v857_v59 = vsel %vm371_vm4, %v2323_v52, 0.0 }
 0x23a   :  { %v1642_v35 = vpop.eup %1641 }
 0x23b   :  { %v2330_v49 = vmul.f32 %v1642_v35, %v2298_v2 }
 0x23d   :  { %v1644_v58 = vpop.eup %1643  ;;  %v859_v2 = vsel %vm371_vm4, %v2330_v49, 0.0 }
 0x23e   :  { %v1646_v42 = vpop.eup %1645  ;;  %v2325_v11 = vmul.f32 %v1644_v58, %v790_v26 }
 0x23f   :  { %v1648_v0 = vpop.eup %1647  ;;  %v2327_v60 = vmul.f32 %v1646_v42, %v791_v47  ;;  %v1020_v42 = vsub.s32 0, %v2502_v38 }
 0x240   :  { %v1650_v56 = vpop.eup %1649  ;;  %v854_v21 = vsel %vm371_vm4, %v2325_v11, 0.0  ;;  %v2338_v12 = vmul.f32 %v1648_v0, %v794_v54 }
 0x241   :  { %v855_v27 = vsel %vm371_vm4, %v2327_v60, 0.0  ;;  %v1652_v1 = vpop.eup %1651  ;;  %v2340_v53 = vmul.f32 %v1650_v56, %v795_v55  ;;  %v970_v55 = vsel %vm968_vm6, %v962_v19, 0 }
 0x242   :  { %v856_v51 = vadd.f32 %v855_v27, %v854_v21  ;;  %v2342_v3 = vmul.f32 %v1652_v1, %v796_v7  ;;  %v1654_v32 = vpop.eup %1653  ;;  %v861_v43 = vsel %vm371_vm4, %v2338_v12, 0.0  ;;  %1506 = vmatpush3.bf16.msra.mxu0 %v970_v55 }
 0x243   :  { %v863_v37 = vsel %vm371_vm4, %v2340_v53, 0.0  ;;  %v2350_v6 = vmul.f32 %v1654_v32, %v797_v31 }
 0x244   :  { %v858_v10 = vadd.f32 %v857_v59, %v856_v51  ;;  %v865_v5 = vsel %vm371_vm4, %v2342_v3, 0.0 }
 0x245   :  { %v867_v16 = vsel %vm371_vm4, %v2350_v6, 0.0 }
 0x246   :  { %v860_v15 = vadd.f32 %v859_v2, %v858_v10 }
 0x248   :  { %v862_v63 = vadd.f32 %v861_v43, %v860_v15  ;;  %v1417_v43 = vld [vmem:[%s2436_s7 + $0x6] ss:$0 sm:$0xff] }
 0x24a   :  { %v864_v46 = vadd.f32 %v863_v37, %v862_v63 }
 0x24c   :  { %v866_v9 = vadd.f32 %v865_v5, %v864_v46 }
 0x24e   :  { %v868_v26 = vadd.f32 %v867_v16, %v866_v9  ;;  %v2503_v9 = vld [vmem:[#allocation6_spill] sm:$0xff] }
 0x250   :  { %v869_v54 = vrot.slane %v868_v26, 4 }
 0x252   :  { %v870_v50 = vadd.f32 %v869_v54, %v868_v26  ;;  %v2504_v54 = vld [vmem:[#allocation7_spill] sm:$0xff] }
 0x254   :  { %v871_v61 = vrot.slane %v870_v50, 2 }
 0x256   :  { %v872_v33 = vadd.f32 %v871_v61, %v870_v50  ;;  %v2505_v61 = vld [vmem:[#allocation8_spill] sm:$0xff] }
 0x258   :  { %v873_v47 = vrot.slane %v872_v33, 1 }
 0x25a   :  { %v874_v8 = vadd.f32 %v873_v47, %v872_v33  ;;  %v2506_v47 = vld [vmem:[#allocation9_spill] sm:$0xff] }
 0x25c   :  { %v876_v24 = vmul.f32 0.015625, %v874_v8 }
 0x25e   :  { %v877_v4 = vpack.c.bf16 %v876_v24, %v876_v24 }
 0x260   :  { %1502 = vmatmul.mubr.msk.bf16.vlgmr.msra.gmra.mxu1 %vm371_vm4, %v877_v4 }
 0x261   :  { %1512 = vmatpush3.bf16.msra.mxu1 %v1554_v44 }
 0x262   :  { %1513 = vmatprep.subr.bf16.mxu1 %v1555_v13 }
 0x265   :  { %1514 = vmatpush3.bf16.msra.mxu1 %v1555_v13 }
 0x266   :  { %1515 = vmatprep.subr.bf16.mxu1 %v1556_v48 }
 0x269   :  { %1516 = vmatpush3.bf16.msra.mxu1 %v1556_v48 }
 0x26a   :  { %1517 = vmatprep.subr.bf16.mxu1 %v1557_v30 }
 0x26d   :  { %1518 = vmatpush3.bf16.msra.mxu1 %v1557_v30  ;;  %v1426_v30 = vld [vmem:[%s2436_s7 + $0x7] ss:$0 sm:$0xff] }
 0x320   :  { %v948_v7 = vpop.f32.mrf.mxu1 }
 0x321   :  { %v949_v31 = vadd.f32 %v948_v7, %v886_v45 }
 0x322   :  { %v1503_v62 = vpop.f32.mrf.mxu1 }
 0x323   :  { %v1414_v41 = vmul.f32 -1.442695, %v949_v31 }
 0x324   :  { %v951_v57 = vpop.f32.mrf.mxu1 }
 0x325   :  { %1655 = vpow2.f32 %v1414_v41  ;;  %v2507_v57 = vld [vmem:[#allocation10_spill] sm:$0xff] }
 0x326   :  { %v1504_v39 = vpop.f32.mrf.mxu1 }
 0x332   :  { %v1656_v25 = vpop.eup %1655 }
 0x333   :  { %v957_v14 = vadd.f32 1.0, %v1656_v25  ;;  %v2508_v25 = vld [vmem:[#allocation11_spill] sm:$0xff] }
 0x335   :  { %1657 = vrcp.f32 %v957_v14 }
 0x342   :  { %v1658_v40 = vpop.eup %1657 }
 0x343   :  { %v960_v28 = vmul.f32 %v1658_v40, %v949_v31  ;;  %v2509_v40 = vld [vmem:[#allocation12_spill] sm:$0xff] }
 0x345   :  { %v961_v23 = vpack.c.bf16 %v960_v28, %v960_v28 }
 0x347   :  { %1508 = vmatmul.mubr.msk.bf16.vlgmr.msra.gmra.mxu0 %vm964_vm8, %v961_v23  ;;  %v2510_v23 = vld [vmem:[#allocation13_spill] sm:$0xff] }
 0x407   :  { %v1006_v34 = vpop.f32.mrf.mxu0 }
 0x408   :  { %v1007_v36 = vadd.f32 %v1006_v34, %v963_v20 }
 0x409   :  { %v1509_v18 = vpop.f32.mrf.mxu0 }
 0x40a   :  { %v1416_v22 = vmul.f32 -1.442695, %v1007_v36 }
 0x40b   :  { %v1009_v29 = vpop.f32.mrf.mxu0 }
 0x40c   :  { %1659 = vpow2.f32 %v1416_v22 }
 0x40d   :  { %v1510_v17 = vpop.f32.mrf.mxu0 }
 0x419   :  { %v1660_v35 = vpop.eup %1659 }
 0x41a   :  { %v1015_v58 = vadd.f32 1.0, %v1660_v35 }
 0x41c   :  { %1661 = vrcp.f32 %v1015_v58 }
 0x429   :  { %v1662_v0 = vpop.eup %1661 }
 0x42a   :  { %v1021_v56 = vrot.slane %v1662_v0, %v1020_v42 }
 0x42c   :  { %v1022_v21 = vmul.f32 %v1021_v56, %v2325_v11  ;;  %v1023_v27 = vmul.f32 %v1021_v56, %v2327_v60  ;;  %v1024_v59 = vmul.f32 %v1021_v56, %v2323_v52  ;;  %v1025_v1 = vmul.f32 %v1021_v56, %v2330_v49  ;;  %v1558_v49 = vld [vmem:[%s2435_s6] sm:$0xff]  }
 0x42d   :  { %v1026_v51 = vmul.f32 %v1021_v56, %v2338_v12  ;;  %v1027_v10 = vmul.f32 %v1021_v56, %v2340_v53  ;;  %v1028_v11 = vmul.f32 %v1021_v56, %v2342_v3  ;;  %v1029_v60 = vmul.f32 %v1021_v56, %v2350_v6  ;;  %1527 = vmatprep.subr.bf16.mxu0 %v1558_v49 }
 0x42e   :  { %v1030_v2 = vpack.c.bf16 %v1023_v27, %v1022_v21  ;;  %v1031_v32 = vpack.c.bf16 %v1025_v1, %v1024_v59  ;;  %1528 = vmatpush3.bf16.msra.mxu0 %v1558_v49 }
 0x42f   :  { %v1032_v15 = vpack.c.bf16 %v1027_v10, %v1026_v51  ;;  %v1033_v52 = vpack.c.bf16 %v1029_v60, %v1028_v11 }
 0x430   :  { %1519 = vmatprep.mubr.msk.bf16.mxu1 %vm371_vm4, %v1030_v2 }
 0x431   :  { %1520 = vmatmul.mubr.msk.bf16.vlgmr.msra.gmra.mxu1 %vm371_vm4, %v1031_v32 }
 0x432   :  { %1523 = vmatprep.mubr.msk.bf16.mxu1 %vm371_vm4, %v1032_v15 }
 0x439   :  { %1524 = vmatmul.mubr.msk.bf16.gmra.mxu1 %vm371_vm4, %v1033_v52  ;;  %vm1331_vm4 = vcmask 253952  }
 0x4f1   :  { %v1521_v12 = vpop.f32.mrf.mxu1 }
 0x4f2   :  { %v1126_v5 = vadd.f32 %v1521_v12, %v1417_v43 }
 0x4f3   :  { %v1117_v53 = vpop.f32.mrf.mxu1 }
 0x4f4   :  { %v1118_v63 = vadd.f32 %v1417_v43, %v1117_v53  ;;  %v1150_v8 = vadd.f32 %v1126_v5, %v2506_v47 }
 0x4f5   :  { %v1522_v37 = vpop.f32.mrf.mxu1 }
 0x4f6   :  { %v1129_v3 = vadd.f32 %v1522_v37, %v1417_v43  ;;  %v1148_v50 = vadd.f32 %v1118_v63, %v2504_v54 }
 0x4f7   :  { %v1120_v6 = vpop.f32.mrf.mxu1 }
 0x4f8   :  { %v1121_v46 = vadd.f32 %v1417_v43, %v1120_v6  ;;  %v1151_v16 = vadd.f32 %v1129_v3, %v2503_v9 }
 0x4f9   :  { %v1525_v26 = vpop.f32.mrf.mxu1 }
 0x4fa   :  { %v1149_v33 = vadd.f32 %v1121_v46, %v2505_v61  ;;  %v1157_v19 = vpack.c.bf16 %v1151_v16, %v1150_v8  ;;  %v1142_v31 = vadd.f32 %v1525_v26, %v1417_v43 }
 0x4fb   :  { %v1133_v24 = vpop.f32.mrf.mxu1 }
 0x4fc   :  { %v1156_v4 = vpack.c.bf16 %v1149_v33, %v1148_v50  ;;  %v1134_v45 = vadd.f32 %v1417_v43, %v1133_v24  ;;  %v1154_v44 = vadd.f32 %v1142_v31, %v2510_v23 }
 0x4fd   :  { %v1526_v55 = vpop.f32.mrf.mxu1 }
 0x4fe   :  { %v1145_v7 = vadd.f32 %v1526_v55, %v1417_v43  ;;  %1529 = vmatprep.mubr.msk.bf16.mxu0 %vm237_vm3, %v1156_v4  ;;  %v1152_v14 = vadd.f32 %v1134_v45, %v2508_v25 }
 0x4ff   :  { %v1136_v62 = vpop.f32.mrf.mxu1  ;;  %1530 = vmatmul.mubr.msk.bf16.vlgmr.msra.gmra.mxu0 %vm237_vm3, %v1157_v19 }
 0x500   :  { %v1137_v41 = vadd.f32 %v1417_v43, %v1136_v62  ;;  %v1155_v39 = vadd.f32 %v1145_v7, %v2507_v57 }
 0x502   :  { %v1153_v28 = vadd.f32 %v1137_v41, %v2509_v40  ;;  %v1159_v48 = vpack.c.bf16 %v1155_v39, %v1154_v44 }
 0x504   :  { %v1158_v13 = vpack.c.bf16 %v1153_v28, %v1152_v14 }
 0x506   :  { %1533 = vmatprep.mubr.msk.bf16.mxu0 %vm237_vm3, %v1158_v13 }
 0x507   :  { %1534 = vmatmul.mubr.msk.bf16.gmra.mxu0 %vm237_vm3, %v1159_v48  ;;  %vm1306_vm3 = vcmask 261120  }
 0x5bf   :  { %v1531_v20 = vpop.f32.mrf.mxu0 }
 0x5c0   :  { %v1228_v34 = vadd.f32 %v1531_v20, %v1426_v30 }
 0x5c1   :  { %v1219_v36 = vpop.f32.mrf.mxu0 }
 0x5c2   :  { %v1434_v18 = vmul.f32 -1.442695, %v1228_v34  ;;  %v1220_v22 = vadd.f32 %v1426_v30, %v1219_v36 }
 0x5c3   :  { %v1532_v29 = vpop.f32.mrf.mxu0 }
 0x5c4   :  { %1663 = vpow2.f32 %v1434_v18  ;;  %v1432_v17 = vmul.f32 -1.442695, %v1220_v22  ;;  %v1231_v35 = vadd.f32 %v1532_v29, %v1426_v30 }
 0x5c5   :  { %v1222_v58 = vpop.f32.mrf.mxu0 }
 0x5c6   :  { %1665 = vpow2.f32 %v1432_v17  ;;  %v1435_v38 = vmul.f32 -1.442695, %v1231_v35  ;;  %v1223_v42 = vadd.f32 %v1426_v30, %v1222_v58 }
 0x5c7   :  { %v1535_v0 = vpop.f32.mrf.mxu0 }
 0x5c8   :  { %1667 = vpow2.f32 %v1435_v38  ;;  %v1433_v56 = vmul.f32 -1.442695, %v1223_v42  ;;  %v1244_v21 = vadd.f32 %v1535_v0, %v1426_v30 }
 0x5c9   :  { %v1235_v27 = vpop.f32.mrf.mxu0 }
 0x5ca   :  { %1669 = vpow2.f32 %v1433_v56  ;;  %v1438_v59 = vmul.f32 -1.442695, %v1244_v21  ;;  %v1236_v1 = vadd.f32 %v1426_v30, %v1235_v27 }
 0x5cb   :  { %v1536_v51 = vpop.f32.mrf.mxu0 }
 0x5cc   :  { %1671 = vpow2.f32 %v1438_v59  ;;  %v1436_v10 = vmul.f32 -1.442695, %v1236_v1  ;;  %v1247_v2 = vadd.f32 %v1536_v51, %v1426_v30  ;;  %v1720_v51 = vmov 0  }
 0x5cd   :  { %v1238_v32 = vpop.f32.mrf.mxu0  ;;  %1542 = vset.pattern.permute.xlu0 %v1720_v51 }
 0x5ce   :  { %1673 = vpow2.f32 %v1436_v10  ;;  %v1439_v15 = vmul.f32 -1.442695, %v1247_v2  ;;  %v1239_v11 = vadd.f32 %v1426_v30, %v1238_v32  ;;  %v1335_v10 = vld [vmem:[%s2436_s7 + $0x9] sm:$0x1] }
 0x5d0   :  { %1675 = vpow2.f32 %v1439_v15  ;;  %v1437_v60 = vmul.f32 -1.442695, %v1239_v11 }
 0x5d1   :  { %v1664_v52 = vpop.eup %1663 }
 0x5d2   :  { %1677 = vpow2.f32 %v1437_v60  ;;  %v1276_v12 = vadd.f32 1.0, %v1664_v52 }
 0x5d3   :  { %v1666_v49 = vpop.eup %1665 }
 0x5d4   :  { %v1274_v53 = vadd.f32 1.0, %v1666_v49 }
 0x5d5   :  { %v1668_v43 = vpop.eup %1667 }
 0x5d6   :  { %1679 = vrcp.f32 %v1274_v53  ;;  %v1277_v37 = vadd.f32 1.0, %v1668_v43 }
 0x5d7   :  { %v1670_v63 = vpop.eup %1669  ;;  %1681 = vrcp.f32 %v1276_v12 }
 0x5d8   :  { %v1275_v3 = vadd.f32 1.0, %v1670_v63  ;;  %1683 = vrcp.f32 %v1277_v37 }
 0x5d9   :  { %v1672_v5 = vpop.eup %1671 }
 0x5da   :  { %1685 = vrcp.f32 %v1275_v3  ;;  %v1280_v46 = vadd.f32 1.0, %v1672_v5 }
 0x5db   :  { %v1674_v6 = vpop.eup %1673 }
 0x5dc   :  { %v1278_v9 = vadd.f32 1.0, %v1674_v6 }
 0x5dd   :  { %v1676_v16 = vpop.eup %1675 }
 0x5de   :  { %1687 = vrcp.f32 %v1278_v9  ;;  %v1281_v26 = vadd.f32 1.0, %v1676_v16 }
 0x5df   :  { %v1678_v54 = vpop.eup %1677  ;;  %1689 = vrcp.f32 %v1280_v46 }
 0x5e0   :  { %v1279_v50 = vadd.f32 1.0, %v1678_v54  ;;  %1691 = vrcp.f32 %v1281_v26 }
 0x5e2   :  { %1693 = vrcp.f32 %v1279_v50 }
 0x5e3   :  { %v1680_v61 = vpop.eup %1679 }
 0x5e4   :  { %v1682_v33 = vpop.eup %1681  ;;  %v1298_v8 = vmul.f32 %v1680_v61, %v1220_v22 }
 0x5e5   :  { %v1684_v47 = vpop.eup %1683  ;;  %v1300_v4 = vmul.f32 %v1682_v33, %v1228_v34 }
 0x5e6   :  { %v1307_v55 = vsel %vm1306_vm3, %v1298_v8, 0.0  ;;  %v1301_v45 = vmul.f32 %v1684_v47, %v1231_v35 }
 0x5e7   :  { %v1686_v24 = vpop.eup %1685  ;;  %v1310_v41 = vsel %vm1306_vm3, %v1300_v4, 0.0 }
 0x5e8   :  { %v1299_v19 = vmul.f32 %v1686_v24, %v1223_v42  ;;  %v1312_v40 = vsel %vm1306_vm3, %v1301_v45, 0.0 }
 0x5ea   :  { %v1308_v7 = vsel %vm1306_vm3, %v1299_v19, 0.0 }
 0x5eb   :  { %v1688_v31 = vpop.eup %1687  ;;  %v1309_v62 = vadd.f32 %v1308_v7, %v1307_v55 }
 0x5ec   :  { %v1302_v57 = vmul.f32 %v1688_v31, %v1236_v1  ;;  %v1690_v39 = vpop.eup %1689 }
 0x5ed   :  { %v1311_v25 = vadd.f32 %v1310_v41, %v1309_v62  ;;  %v1692_v14 = vpop.eup %1691  ;;  %v1304_v44 = vmul.f32 %v1690_v39, %v1244_v21  ;;  %v1329_v21 = vld [vmem:[%s2436_s7 + $0x8] sm:$0x1] }
 0x5ee   :  { %v1314_v13 = vsel %vm1306_vm3, %v1302_v57, 0.0  ;;  %v1305_v20 = vmul.f32 %v1692_v14, %v1247_v2 }
 0x5ef   :  { %v1694_v28 = vpop.eup %1693  ;;  %v1313_v23 = vadd.f32 %v1312_v40, %v1311_v25  ;;  %v1318_v18 = vsel %vm1306_vm3, %v1304_v44, 0.0 }
 0x5f0   :  { %v1303_v48 = vmul.f32 %v1694_v28, %v1239_v11  ;;  %v1320_v29 = vsel %vm1306_vm3, %v1305_v20, 0.0 }
 0x5f1   :  { %v1315_v30 = vadd.f32 %v1314_v13, %v1313_v23 }
 0x5f2   :  { %v1316_v34 = vsel %vm1306_vm3, %v1303_v48, 0.0 }
 0x5f3   :  { %v1317_v36 = vadd.f32 %v1316_v34, %v1315_v30 }
 0x5f5   :  { %v1319_v22 = vadd.f32 %v1318_v18, %v1317_v36 }
 0x5f7   :  { %v1321_v17 = vadd.f32 %v1320_v29, %v1319_v22 }
 0x5f9   :  { %v1322_v35 = vrot.slane %v1321_v17, 4 }
 0x5fb   :  { %v1323_v58 = vadd.f32 %v1322_v35, %v1321_v17 }
 0x5fd   :  { %v1324_v38 = vrot.slane %v1323_v58, 2 }
 0x5ff   :  { %v1325_v42 = vadd.f32 %v1324_v38, %v1323_v58 }
 0x601   :  { %v1326_v0 = vrot.slane %v1325_v42, 1 }
 0x603   :  { %v1327_v56 = vadd.f32 %v1326_v0, %v1325_v42 }
 0x605   :  { %v1328_v27 = vmul.f32 0.015625, %v1327_v56 }
 0x607   :  { %v1330_v59 = vmul.f32 %v1329_v21, %v1328_v27 }
 0x609   :  { %v1332_v1 = vsel %vm1331_vm4, %v1330_v59, 0.0 }
 0x60a   :  { %1333 = vadd.xlane.f32.xlu0 %v1332_v1 }
 0x693   :  { %v1334_v2 = vpop.xlane.xlu0 %1333 }
 0x694   :  { %v1336_v32 = vadd.f32 %v1335_v10, %v1334_v2 }
 0x696   :  { %1339 = vperm.xlu0 %1542, %v1336_v32  }
 0x711   :  { %v1340_v15 = vpop.permute.xlu0 %1339 }
 0x712   :  { %1342 = vst [vmem:[#allocation3] sm:$0x1] %v1340_v15 }
 0x713   :  { %1706 = shalt.err (!%p1703_p4)
}
 0x714   :  { %1352 = dma.vmem_to_hbm [thread:$0]  %s1350_s20, 16, %s2437_s8, [#allocation4]  }
 0x715   :  { %1715 = dma.done.wait [#allocation4], 16  }
 0x716   :  { %1716 = vsyncadd [#allocation4], 4294967280 }
 0x717   :  { %1356 = vsyncpa [#allocation4], 1 }

</bundles_post_ra>
